<compile_context>
chip_gen: v7x
topology: tpu7x:2x2x1
jax: 0.10.0
libtpu: 0.0.40
codegen_flags: <defaults>
</compile_context>

<pallas_src>
import functools
from typing import NamedTuple, Optional

import jax
import jax.numpy as jnp
from jax.experimental import pallas as pl
from jax.experimental.pallas import tpu as pltpu


def _round_up(x: int, m: int) -> int:
    return ((x + m - 1) // m) * m


class ModulatorParams(NamedTuple):
    wz_all: jax.Array            # (D_in, depth*H), compute dtype
    wh_all: Optional[jax.Array]  # (depth-1, H, H), compute dtype; None if depth == 1
    b_all: jax.Array             # (depth, H), float32


def prepare_modulator_params(weights, biases=None, compute_dtype=jnp.bfloat16):
    """One-time parameter prep (hoisted out of the hot path).

    weights[0]: (H, D_in); weights[i>0]: (H, H + D_in)  (PyTorch nn.Linear layout)
    biases: list of (H,) arrays (entries may be None), or None.
    """
    depth = len(weights)
    dim_hidden, dim_in = weights[0].shape
    cdt = jnp.dtype(compute_dtype)

    wz_cols, wh_list, b_list = [], [], []
    for i, w in enumerate(weights):
        w = jnp.asarray(w)
        if i == 0:
            assert w.shape == (dim_hidden, dim_in)
            wz = w.T                                  # (D_in, H)
        else:
            assert w.shape == (dim_hidden, dim_hidden + dim_in)
            # torch.cat((x, z), -1): first H input cols act on h, the rest on z.
            wh_list.append(w[:, :dim_hidden].T.astype(cdt))   # (H, H)
            wz = w[:, dim_hidden:].T                          # (D_in, H)
        wz_cols.append(wz.astype(cdt))
        b = None if biases is None else biases[i]
        b_list.append(jnp.zeros((dim_hidden,), jnp.float32) if b is None
                      else jnp.asarray(b, jnp.float32))

    wz_all = jnp.concatenate(wz_cols, axis=1)                 # (D_in, depth*H)
    wh_all = jnp.stack(wh_list) if wh_list else None          # (depth-1, H, H)
    b_all = jnp.stack(b_list)                                 # (depth, H)
    return ModulatorParams(wz_all=wz_all, wh_all=wh_all, b_all=b_all)


def _modulator_kernel(*refs, depth, dim_hidden):
    """Fused Modulator forward for one batch tile.

    refs = (z_ref, wz_all_ref[, wh_all_ref], b_all_ref, o_ref)
      z_ref:      (tn, D_in)          compute dtype
      wz_all_ref: (D_in, depth*H)     compute dtype  (z-parts of all layers)
      wh_all_ref: (depth-1, H, H)     compute dtype  (h-parts of layers 1..)
      b_all_ref:  (depth, H)          float32
      o_ref:      (tn, depth*H)       output slab (layer i -> cols [i*H, (i+1)*H))
    """
    H = dim_hidden
    if depth > 1:
        z_ref, wz_all_ref, wh_all_ref, b_all_ref, o_ref = refs
    else:
        z_ref, wz_all_ref, b_all_ref, o_ref = refs
        wh_all_ref = None

    z = z_ref[...]                       # (tn, D_in), compute dtype
    cdt = z.dtype

    # One wide matmul: the z contribution to ALL layers at once (N = depth*H).
    zc = jnp.dot(z, wz_all_ref[...], preferred_element_type=jnp.float32)

    h = None
    for i in range(depth):
        # y_i = cat(h, z) @ W_i.T + b_i, computed as a split matmul (no concat).
        y = zc[:, i * H:(i + 1) * H] + b_all_ref[i:i + 1, :]
        if i > 0:
            y = y + jnp.dot(h, wh_all_ref[i - 1],
                            preferred_element_type=jnp.float32)
        relu = jnp.maximum(y, 0.0)                      # f32 epilogue (v5e-safe)
        o_ref[:, i * H:(i + 1) * H] = relu.astype(o_ref.dtype)
        if i + 1 < depth:
            h = relu.astype(cdt)                        # feed next layer's MXU


def modulator_forward(z, params: ModulatorParams, *, tn=1024, out_dtype=None,
                      return_stacked=False):
    """Pallas implementation of Modulator.forward.

    z: (N, dim_in).  Returns a list of `depth` (N, H) arrays (PyTorch parity),
    or a single (N, depth, H) array when return_stacked=True (no extra copy).
    """
    n, dim_in = z.shape
    depth, dim_hidden = params.b_all.shape
    H = dim_hidden
    assert params.wz_all.shape == (dim_in, depth * H)
    cdt = params.wz_all.dtype
    odt = jnp.dtype(out_dtype) if out_dtype is not None else jnp.dtype(z.dtype)

    # NOTE: keep dim_hidden a multiple of 128 for unmasked lane-dense stores.

    # ---- batch tile: cap so grid has >= 2 steps (megacore / pipelining), ----
    # ---- then shrink to fit the generation-aware VMEM budget.             ----
    row_align = 16 if cdt == jnp.bfloat16 else 8
    half = _round_up(max(1, -(-n // 2)), row_align)
    tn_eff = max(row_align, min(int(tn), half))

    bpe_in = jnp.dtype(cdt).itemsize
    bpe_out = odt.itemsize
    w_bytes = int(params.wz_all.size) * params.wz_all.dtype.itemsize
    if params.wh_all is not None:
        w_bytes += int(params.wh_all.size) * params.wh_all.dtype.itemsize
    w_bytes += int(params.b_all.size) * params.b_all.dtype.itemsize

    def _vmem_estimate(t):
        act = 2 * t * dim_in * bpe_in            # z tile, double-buffered
        act += 2 * t * depth * H * bpe_out       # output slab, double-buffered
        act += t * depth * H * 4                 # zc (f32)
        act += 3 * t * H * 4                     # live f32 intermediates
        return act + w_bytes                     # weights single-buffered

    try:
        vmem_cap = int(pltpu.get_tpu_info().vmem_capacity_bytes)
    except Exception:
        vmem_cap = 64 << 20                      # conservative (v7x-sized)
    if vmem_cap >= (96 << 20):                   # 128 MiB parts (v5e / v6e)
        fit_budget, limit_cap = 80 << 20, 100 << 20
    else:                                        # 64 MiB per TensorCore (v7x)
        fit_budget, limit_cap = 40 << 20, 52 << 20

    while tn_eff > row_align and _vmem_estimate(tn_eff) > fit_budget:
        tn_eff = max(row_align, _round_up(tn_eff // 2, row_align))

    grid = (pl.cdiv(n, tn_eff),)
    vmem_limit = int(min(limit_cap, max(32 << 20, _vmem_estimate(tn_eff) + (16 << 20))))

    z_in = z.astype(cdt)
    flat_params = [params.wz_all]
    if params.wh_all is not None:
        flat_params.append(params.wh_all)
    flat_params.append(params.b_all)

    kernel = functools.partial(_modulator_kernel, depth=depth, dim_hidden=H)
    out_shape = jax.ShapeDtypeStruct((n, depth * H), odt)

    def _call(use_buffered):
        def const_spec(shape):
            imap = lambda j, _r=len(shape): (0,) * _r
            if use_buffered:
                # constant block across the grid -> single-buffer it
                return pl.BlockSpec(shape, imap, pipeline_mode=pl.Buffered(1))
            return pl.BlockSpec(shape, imap)

        in_specs = [pl.BlockSpec((tn_eff, dim_in), lambda j: (j, 0)),
                    const_spec((dim_in, depth * H))]
        if params.wh_all is not None:
            in_specs.append(const_spec((depth - 1, H, H)))
        in_specs.append(const_spec((depth, H)))

        return pl.pallas_call(
            kernel,
            out_shape=out_shape,
            grid_spec=pltpu.PrefetchScalarGridSpec(
                num_scalar_prefetch=0,
                grid=grid,
                in_specs=in_specs,
                out_specs=pl.BlockSpec((tn_eff, depth * H), lambda j: (j, 0)),
            ),
            compiler_params=pltpu.CompilerParams(
                dimension_semantics=("parallel",),
                vmem_limit_bytes=vmem_limit,
            ),
        )(z_in, *flat_params)

    try:
        slab = _call(True)
    except Exception:
        # Fallback for JAX versions without pipeline_mode / Buffered(1).
        slab = _call(False)

    if return_stacked:
        return slab.reshape(n, depth, H)
    return [slab[:, i * H:(i + 1) * H] for i in range(depth)]


if __name__ == "__main__":
    # Small shapes consistent with the module; hidden width kept lane-dense (128).
    DIM_IN, DIM_HIDDEN, DEPTH = 32, 128, 3
    N = 200   # deliberately NOT a tile multiple -> exercises the partial block

    key = jax.random.PRNGKey(0)
    keys = jax.random.split(key, 2 * DEPTH + 1)
    z = jax.random.normal(keys[0], (N, DIM_IN), jnp.float32)

    # nn.Linear default init: U(-1/sqrt(fan_in), 1/sqrt(fan_in)).
    weights, biases = [], []
    for i in range(DEPTH):
        fan_in = DIM_IN if i == 0 else DIM_HIDDEN + DIM_IN
        bound = 1.0 / (fan_in ** 0.5)
        w = jax.random.uniform(keys[1 + 2 * i], (DIM_HIDDEN, fan_in), jnp.float32,
                               -bound, bound)
        b = jax.random.uniform(keys[2 + 2 * i], (DIM_HIDDEN,), jnp.float32,
                               -bound, bound)
        weights.append(w)
        biases.append(b)

    # Pure-JAX reference of the PyTorch forward.
    x = z
    ref = []
    for i in range(DEPTH):
        x = jnp.maximum(x @ weights[i].T + biases[i], 0.0)
        ref.append(x)
        x = jnp.concatenate([x, z], axis=-1)

    # f32 compute path (tight-ish check; covers MXU matmul precision modes).
    params_f32 = prepare_modulator_params(weights, biases, compute_dtype=jnp.float32)
    hiddens = modulator_forward(z, params_f32)
    jax.block_until_ready(hiddens)
    for h, r in zip(hiddens, ref):
        assert h.shape == r.shape and h.dtype == r.dtype
        err = float(jnp.max(jnp.abs(h - r)))
        assert jnp.allclose(h, r, atol=5e-3, rtol=5e-3), err

    # Default fast path: bf16 z/weights, f32 accumulation + epilogue (loose check).
    params_bf16 = prepare_modulator_params(weights, biases)    # bf16 by default
    hiddens_fast = modulator_forward(z, params_bf16)
    jax.block_until_ready(hiddens_fast)
    for h, r in zip(hiddens_fast, ref):
        err = float(jnp.max(jnp.abs(h - r)))
        assert jnp.allclose(h, r, atol=1e-1, rtol=1e-1), err

    # Stacked lane-dense output + bf16 stores (no wrapper-side splitting).
    stacked = modulator_forward(z, params_bf16, return_stacked=True,
                                out_dtype=jnp.bfloat16)
    jax.block_until_ready(stacked)
    assert stacked.shape == (N, DEPTH, DIM_HIDDEN) and stacked.dtype == jnp.bfloat16

    print("KERNEL_OK")
</pallas_src>

<mosaic_0001>
module attributes {stable_mosaic.version = 11 : i64} {
  func.func @_modulator_kernel(%arg0: i32, %arg1: memref<104x32xf32, #tpu.memory_space<vmem>>, %arg2: memref<32x384xf32, #tpu.memory_space<vmem>>, %arg3: memref<2x128x128xf32, #tpu.memory_space<vmem>>, %arg4: memref<3x128xf32, #tpu.memory_space<vmem>>, %arg5: memref<104x384xf32, #tpu.memory_space<vmem>>) attributes {dimension_semantics = [#tpu.dimension_semantics<parallel>], iteration_bounds = array<i64: 2>, scalar_prefetch = 0 : i64, scratch_operands = 0 : i64, tpu.core_type = #tpu.core_type<tc>, window_params = [{transform_indices = @transform_0, window_bounds = array<i64: 104, 32>}, {pipeline_mode = #tpu.pipeline_mode<synchronous>, transform_indices = @transform_1, window_bounds = array<i64: 32, 384>}, {pipeline_mode = #tpu.pipeline_mode<synchronous>, transform_indices = @transform_2, window_bounds = array<i64: 2, 128, 128>}, {pipeline_mode = #tpu.pipeline_mode<synchronous>, transform_indices = @transform_3, window_bounds = array<i64: 3, 128>}, {transform_indices = @transform_4, window_bounds = array<i64: 104, 384>}]} {
    %c0 = arith.constant 0 : index
    %c0_0 = arith.constant 0 : index
    %0 = vector.load %arg1[%c0, %c0_0] : memref<104x32xf32, #tpu.memory_space<vmem>>, vector<104x32xf32>
    %c0_1 = arith.constant 0 : index
    %c0_2 = arith.constant 0 : index
    %1 = vector.load %arg2[%c0_1, %c0_2] : memref<32x384xf32, #tpu.memory_space<vmem>>, vector<32x384xf32>
    %cst = arith.constant dense<0.000000e+00> : vector<104x384xf32>
    %2 = tpu.matmul %0, %1, %cst {dimension_numbers = #tpu.dot_dimension_numbers<[1], [0], [0], [1], [0, 0, 1, 1], [], []>} : vector<104x32xf32>, vector<32x384xf32>, vector<104x384xf32> -> vector<104x384xf32>
    %3 = vector.extract_strided_slice %2 {offsets = [0, 0], sizes = [104, 128], strides = [1, 1]} : vector<104x384xf32> to vector<104x128xf32>
    %c0_3 = arith.constant 0 : index
    %c0_4 = arith.constant 0 : index
    %4 = vector.load %arg4[%c0_3, %c0_4] : memref<3x128xf32, #tpu.memory_space<vmem>>, vector<1x128xf32>
    %5 = vector.broadcast %4 : vector<1x128xf32> to vector<104x128xf32>
    %6 = arith.addf %3, %5 : vector<104x128xf32>
    %cst_5 = arith.constant 0.000000e+00 : f32
    %7 = vector.broadcast %cst_5 : f32 to vector<104x128xf32>
    %8 = arith.maximumf %6, %7 : vector<104x128xf32>
    %c0_6 = arith.constant 0 : index
    %c0_7 = arith.constant 0 : index
    %9 = vector.load %arg5[%c0_6, %c0_7] : memref<104x384xf32, #tpu.memory_space<vmem>>, vector<104x128xf32>
    tpu.vector_store %arg5[%c0_6, %c0_7], %8 {strides = array<i32>} : memref<104x384xf32, #tpu.memory_space<vmem>>, vector<104x128xf32>,
    %10 = vector.extract_strided_slice %2 {offsets = [0, 128], sizes = [104, 128], strides = [1, 1]} : vector<104x384xf32> to vector<104x128xf32>
    %c1 = arith.constant 1 : index
    %c0_8 = arith.constant 0 : index
    %11 = vector.load %arg4[%c1, %c0_8] : memref<3x128xf32, #tpu.memory_space<vmem>>, vector<1x128xf32>
    %12 = vector.broadcast %11 : vector<1x128xf32> to vector<104x128xf32>
    %13 = arith.addf %10, %12 : vector<104x128xf32>
    %c0_9 = arith.constant 0 : index
    %c0_10 = arith.constant 0 : index
    %c0_11 = arith.constant 0 : index
    %14 = vector.load %arg3[%c0_9, %c0_10, %c0_11] : memref<2x128x128xf32, #tpu.memory_space<vmem>>, vector<1x128x128xf32>
    %15 = vector.shape_cast %14 : vector<1x128x128xf32> to vector<128x128xf32>
    %cst_12 = arith.constant dense<0.000000e+00> : vector<104x128xf32>
    %16 = tpu.matmul %8, %15, %cst_12 {dimension_numbers = #tpu.dot_dimension_numbers<[1], [0], [0], [1], [0, 0, 1, 1], [], []>} : vector<104x128xf32>, vector<128x128xf32>, vector<104x128xf32> -> vector<104x128xf32>
    %17 = arith.addf %13, %16 : vector<104x128xf32>
    %cst_13 = arith.constant 0.000000e+00 : f32
    %18 = vector.broadcast %cst_13 : f32 to vector<104x128xf32>
    %19 = arith.maximumf %17, %18 : vector<104x128xf32>
    %c0_14 = arith.constant 0 : index
    %c128 = arith.constant 128 : index
    %20 = vector.load %arg5[%c0_14, %c128] : memref<104x384xf32, #tpu.memory_space<vmem>>, vector<104x128xf32>
    tpu.vector_store %arg5[%c0_14, %c128], %19 {strides = array<i32>} : memref<104x384xf32, #tpu.memory_space<vmem>>, vector<104x128xf32>,
    %21 = vector.extract_strided_slice %2 {offsets = [0, 256], sizes = [104, 128], strides = [1, 1]} : vector<104x384xf32> to vector<104x128xf32>
    %c2 = arith.constant 2 : index
    %c0_15 = arith.constant 0 : index
    %22 = vector.load %arg4[%c2, %c0_15] : memref<3x128xf32, #tpu.memory_space<vmem>>, vector<1x128xf32>
    %23 = vector.broadcast %22 : vector<1x128xf32> to vector<104x128xf32>
    %24 = arith.addf %21, %23 : vector<104x128xf32>
    %c1_16 = arith.constant 1 : index
    %c0_17 = arith.constant 0 : index
    %c0_18 = arith.constant 0 : index
    %25 = vector.load %arg3[%c1_16, %c0_17, %c0_18] : memref<2x128x128xf32, #tpu.memory_space<vmem>>, vector<1x128x128xf32>
    %26 = vector.shape_cast %25 : vector<1x128x128xf32> to vector<128x128xf32>
    %cst_19 = arith.constant dense<0.000000e+00> : vector<104x128xf32>
    %27 = tpu.matmul %19, %26, %cst_19 {dimension_numbers = #tpu.dot_dimension_numbers<[1], [0], [0], [1], [0, 0, 1, 1], [], []>} : vector<104x128xf32>, vector<128x128xf32>, vector<104x128xf32> -> vector<104x128xf32>
    %28 = arith.addf %24, %27 : vector<104x128xf32>
    %cst_20 = arith.constant 0.000000e+00 : f32
    %29 = vector.broadcast %cst_20 : f32 to vector<104x128xf32>
    %30 = arith.maximumf %28, %29 : vector<104x128xf32>
    %c0_21 = arith.constant 0 : index
    %c256 = arith.constant 256 : index
    %31 = vector.load %arg5[%c0_21, %c256] : memref<104x384xf32, #tpu.memory_space<vmem>>, vector<104x128xf32>
    tpu.vector_store %arg5[%c0_21, %c256], %30 {strides = array<i32>} : memref<104x384xf32, #tpu.memory_space<vmem>>, vector<104x128xf32>,
    return
  }
  func.func @transform_0(%arg0: i32) -> (i32, i32) {
    %c0_i32 = arith.constant 0 : i32
    %c0_i32_0 = arith.constant 0 : i32
    return %arg0, %c0_i32 : i32, i32
  }
  func.func @transform_1(%arg0: i32) -> (i32, i32) {
    %c0_i32 = arith.constant 0 : i32
    %c0_i32_0 = arith.constant 0 : i32
    %c0_i32_1 = arith.constant 0 : i32
    return %c0_i32, %c0_i32_0 : i32, i32
  }
  func.func @transform_2(%arg0: i32) -> (i32, i32, i32) {
    %c0_i32 = arith.constant 0 : i32
    %c0_i32_0 = arith.constant 0 : i32
    %c0_i32_1 = arith.constant 0 : i32
    %c0_i32_2 = arith.constant 0 : i32
    return %c0_i32, %c0_i32_0, %c0_i32_1 : i32, i32, i32
  }
  func.func @transform_3(%arg0: i32) -> (i32, i32) {
    %c0_i32 = arith.constant 0 : i32
    %c0_i32_0 = arith.constant 0 : i32
    %c0_i32_1 = arith.constant 0 : i32
    return %c0_i32, %c0_i32_0 : i32, i32
  }
  func.func @transform_4(%arg0: i32) -> (i32, i32) {
    %c0_i32 = arith.constant 0 : i32
    %c0_i32_0 = arith.constant 0 : i32
    return %arg0, %c0_i32 : i32, i32
  }
}

module attributes {stable_mosaic.version = 11 : i64} {
  func.func @_modulator_kernel(%arg0: i32, %arg1: memref<104x32xf32, #tpu.memory_space<vmem>>, %arg2: memref<32x384xf32, #tpu.memory_space<vmem>>, %arg3: memref<2x128x128xf32, #tpu.memory_space<vmem>>, %arg4: memref<3x128xf32, #tpu.memory_space<vmem>>, %arg5: memref<104x384xf32, #tpu.memory_space<vmem>>) attributes {dimension_semantics = [#tpu.dimension_semantics<parallel>], iteration_bounds = array<i64: 2>, scalar_prefetch = 0 : i64, scratch_operands = 0 : i64, tpu.core_type = #tpu.core_type<tc>, window_params = [{transform_indices = @transform_0, window_bounds = array<i64: 104, 32>}, {pipeline_mode = #tpu.pipeline_mode<synchronous>, transform_indices = @transform_1, window_bounds = array<i64: 32, 384>}, {pipeline_mode = #tpu.pipeline_mode<synchronous>, transform_indices = @transform_2, window_bounds = array<i64: 2, 128, 128>}, {pipeline_mode = #tpu.pipeline_mode<synchronous>, transform_indices = @transform_3, window_bounds = array<i64: 3, 128>}, {transform_indices = @transform_4, window_bounds = array<i64: 104, 384>}]} {
    %c0 = arith.constant 0 : index
    %c0_0 = arith.constant 0 : index
    %0 = vector.load %arg1[%c0, %c0_0] : memref<104x32xf32, #tpu.memory_space<vmem>>, vector<104x32xf32>
    %c0_1 = arith.constant 0 : index
    %c0_2 = arith.constant 0 : index
    %1 = vector.load %arg2[%c0_1, %c0_2] : memref<32x384xf32, #tpu.memory_space<vmem>>, vector<32x384xf32>
    %cst = arith.constant dense<0.000000e+00> : vector<104x384xf32>
    %2 = tpu.matmul %0, %1, %cst {dimension_numbers = #tpu.dot_dimension_numbers<[1], [0], [0], [1], [0, 0, 1, 1], [], []>} : vector<104x32xf32>, vector<32x384xf32>, vector<104x384xf32> -> vector<104x384xf32>
    %3 = vector.extract_strided_slice %2 {offsets = [0, 0], sizes = [104, 128], strides = [1, 1]} : vector<104x384xf32> to vector<104x128xf32>
    %c0_3 = arith.constant 0 : index
    %c0_4 = arith.constant 0 : index
    %4 = vector.load %arg4[%c0_3, %c0_4] : memref<3x128xf32, #tpu.memory_space<vmem>>, vector<1x128xf32>
    %5 = vector.broadcast %4 : vector<1x128xf32> to vector<104x128xf32>
    %6 = arith.addf %3, %5 : vector<104x128xf32>
    %cst_5 = arith.constant 0.000000e+00 : f32
    %7 = vector.broadcast %cst_5 : f32 to vector<104x128xf32>
    %8 = arith.maximumf %6, %7 : vector<104x128xf32>
    %c0_6 = arith.constant 0 : index
    %c0_7 = arith.constant 0 : index
    %9 = vector.load %arg5[%c0_6, %c0_7] : memref<104x384xf32, #tpu.memory_space<vmem>>, vector<104x128xf32>
    tpu.vector_store %arg5[%c0_6, %c0_7], %8 {strides = array<i32>} : memref<104x384xf32, #tpu.memory_space<vmem>>, vector<104x128xf32>,
    %10 = vector.extract_strided_slice %2 {offsets = [0, 128], sizes = [104, 128], strides = [1, 1]} : vector<104x384xf32> to vector<104x128xf32>
    %c1 = arith.constant 1 : index
    %c0_8 = arith.constant 0 : index
    %11 = vector.load %arg4[%c1, %c0_8] : memref<3x128xf32, #tpu.memory_space<vmem>>, vector<1x128xf32>
    %12 = vector.broadcast %11 : vector<1x128xf32> to vector<104x128xf32>
    %13 = arith.addf %10, %12 : vector<104x128xf32>
    %c0_9 = arith.constant 0 : index
    %c0_10 = arith.constant 0 : index
    %c0_11 = arith.constant 0 : index
    %14 = vector.load %arg3[%c0_9, %c0_10, %c0_11] : memref<2x128x128xf32, #tpu.memory_space<vmem>>, vector<1x128x128xf32>
    %15 = vector.shape_cast %14 : vector<1x128x128xf32> to vector<128x128xf32>
    %cst_12 = arith.constant dense<0.000000e+00> : vector<104x128xf32>
    %16 = tpu.matmul %8, %15, %cst_12 {dimension_numbers = #tpu.dot_dimension_numbers<[1], [0], [0], [1], [0, 0, 1, 1], [], []>} : vector<104x128xf32>, vector<128x128xf32>, vector<104x128xf32> -> vector<104x128xf32>
    %17 = arith.addf %13, %16 : vector<104x128xf32>
    %cst_13 = arith.constant 0.000000e+00 : f32
    %18 = vector.broadcast %cst_13 : f32 to vector<104x128xf32>
    %19 = arith.maximumf %17, %18 : vector<104x128xf32>
    %c0_14 = arith.constant 0 : index
    %c128 = arith.constant 128 : index
    %20 = vector.load %arg5[%c0_14, %c128] : memref<104x384xf32, #tpu.memory_space<vmem>>, vector<104x128xf32>
    tpu.vector_store %arg5[%c0_14, %c128], %19 {strides = array<i32>} : memref<104x384xf32, #tpu.memory_space<vmem>>, vector<104x128xf32>,
    %21 = vector.extract_strided_slice %2 {offsets = [0, 256], sizes = [104, 128], strides = [1, 1]} : vector<104x384xf32> to vector<104x128xf32>
    %c2 = arith.constant 2 : index
    %c0_15 = arith.constant 0 : index
    %22 = vector.load %arg4[%c2, %c0_15] : memref<3x128xf32, #tpu.memory_space<vmem>>, vector<1x128xf32>
    %23 = vector.broadcast %22 : vector<1x128xf32> to vector<104x128xf32>
    %24 = arith.addf %21, %23 : vector<104x128xf32>
    %c1_16 = arith.constant 1 : index
    %c0_17 = arith.constant 0 : index
    %c0_18 = arith.constant 0 : index
    %25 = vector.load %arg3[%c1_16, %c0_17, %c0_18] : memref<2x128x128xf32, #tpu.memory_space<vmem>>, vector<1x128x128xf32>
    %26 = vector.shape_cast %25 : vector<1x128x128xf32> to vector<128x128xf32>
    %cst_19 = arith.constant dense<0.000000e+00> : vector<104x128xf32>
    %27 = tpu.matmul %19, %26, %cst_19 {dimension_numbers = #tpu.dot_dimension_numbers<[1], [0], [0], [1], [0, 0, 1, 1], [], []>} : vector<104x128xf32>, vector<128x128xf32>, vector<104x128xf32> -> vector<104x128xf32>
    %28 = arith.addf %24, %27 : vector<104x128xf32>
    %cst_20 = arith.constant 0.000000e+00 : f32
    %29 = vector.broadcast %cst_20 : f32 to vector<104x128xf32>
    %30 = arith.maximumf %28, %29 : vector<104x128xf32>
    %c0_21 = arith.constant 0 : index
    %c256 = arith.constant 256 : index
    %31 = vector.load %arg5[%c0_21, %c256] : memref<104x384xf32, #tpu.memory_space<vmem>>, vector<104x128xf32>
    tpu.vector_store %arg5[%c0_21, %c256], %30 {strides = array<i32>} : memref<104x384xf32, #tpu.memory_space<vmem>>, vector<104x128xf32>,
    return
  }
  func.func @transform_0(%arg0: i32) -> (i32, i32) {
    %c0_i32 = arith.constant 0 : i32
    %c0_i32_0 = arith.constant 0 : i32
    return %arg0, %c0_i32 : i32, i32
  }
  func.func @transform_1(%arg0: i32) -> (i32, i32) {
    %c0_i32 = arith.constant 0 : i32
    %c0_i32_0 = arith.constant 0 : i32
    %c0_i32_1 = arith.constant 0 : i32
    return %c0_i32, %c0_i32_0 : i32, i32
  }
  func.func @transform_2(%arg0: i32) -> (i32, i32, i32) {
    %c0_i32 = arith.constant 0 : i32
    %c0_i32_0 = arith.constant 0 : i32
    %c0_i32_1 = arith.constant 0 : i32
    %c0_i32_2 = arith.constant 0 : i32
    return %c0_i32, %c0_i32_0, %c0_i32_1 : i32, i32, i32
  }
  func.func @transform_3(%arg0: i32) -> (i32, i32) {
    %c0_i32 = arith.constant 0 : i32
    %c0_i32_0 = arith.constant 0 : i32
    %c0_i32_1 = arith.constant 0 : i32
    return %c0_i32, %c0_i32_0 : i32, i32
  }
  func.func @transform_4(%arg0: i32) -> (i32, i32) {
    %c0_i32 = arith.constant 0 : i32
    %c0_i32_0 = arith.constant 0 : i32
    return %arg0, %c0_i32 : i32, i32
  }
}

</mosaic_0001>

<bundles_post_ra>
// kernel: tpu_custom_call.1
= control target key start
LH: loop header
LB: loop body
LE: loop exit
PB: predicated region body
PF: predicated region fallthrough
CT: control target
= control target key end

     0   :  { %9 = vsyncpa [#allocation3], 0  ;;  %s2311_s0 = inlined_call_operand.vmem [shape: f32[200,32], index: 0, kind: input, shape index: {}]   ;;  %s2312_s1 = inlined_call_operand.hbm [shape: f32[32,384], index: 1, kind: input, shape index: {}]   ;;  %s2313_s2 = inlined_call_operand.vmem [shape: f32[2,128,128], index: 2, kind: input, shape index: {}]   ;;  %s2314_s3 = inlined_call_operand.vmem [shape: f32[3,128], index: 3, kind: input, shape index: {}]   ;;  %s2315_s4 = inlined_call_operand.hbm [shape: f32[200,384], index: 4, kind: output, shape index: {}]  }
   0x1   :  { %10 = vsyncpa [#allocation4], 0 }
   0x2   :  { %12 = vsyncpa [#allocation4 + $0x1], 0  ;;  %s1737_s15 = smov 0   ;;  %s1739_s16 = smov 0  }
   0x3   :  { %s1741_s17 = smov 0   ;;  %s1743_s18 = smov 0  }
   0x4 LB: > { %s1758_s19 = sadd.s32 4294967295, %s1701_s18   ;;  %s1124_s20 = sadd.s32 4294967294, %s1701_s18   ;;  %s1701_s18 = sphi %s1743_s18, %s2330_s18   ;;  %s1697_s17 = sphi %s1741_s17, %s2329_s17   ;;  %s1693_s16 = sphi %s1739_s16, %s2328_s16   ;;  %s1689_s15 = sphi %s1737_s15, %s2327_s15  }
   0x5   : > { %s1762_s21 = sadd.s32 1, %s1701_s18   ;;  %s114_s22 = sadd.s32 1, %s1697_s17 }
   0x6   : > { %s111_s23 = ssub.s32 %s1701_s18, %s1762_s21  ;;  %p124_p0 = scmp.ne.s32.totalorder %s1697_s17, %s1693_s16 }
   0x7   : > { %p112_p1 = scmp.eq.s32.totalorder %s111_s23, 0  ;;  %p125_p2 = scmp.eq.s32.totalorder %s1758_s19, 1 }
   0x8   : > { %p130_p3 = scmp.ne.s32.totalorder %s1693_s16, %s1689_s15  ;;  %p131_p4 = scmp.eq.s32.totalorder %s1124_s20, 1 }
   0x9   : > { %s1773_s24 = scalar_select %p112_p1, %s1697_s17, %s114_s22  }
   0xa   : > { %p1775_p5 = por %p125_p2, %p124_p0  ;;  %p1779_p6 = por %p131_p4, %p130_p3 }
   0xb   : > { %p1125_p7 = scmp.ge.s32.totalorder %s1701_s18, 1  ;;  %p138_p8 = scmp.lt.s32.totalorder %s1701_s18, 3 }
   0xc   : > { %s2318_s25 = scalar_select %p1775_p5, 1, 0 }
   0xd   : > { %s2319_s26 = scalar_select %p1779_p6, 1, 0 }
   0xe   : > { %p2316_p9 = scmp.eq.s32.totalorder %s1758_s19, 0  ;;  %p1786_p10 = pnand %p1125_p7, %p138_p8 }
   0xf   : > { %s1703_s28 = smov [#allocation2]   ;;  %s1607_s7 = scalar_lea.hbm %s2312_s1, 1536 }
  0x10   : > { %s2320_s27 = scalar_select %p1786_p10, 1, 0 }
  0x11   : > { %s150_s29 = sshll.u32 %s1703_s28, 4  ;;  %p1555_p11 = pneg %p1786_p10  ;;  %s151_s29 = int_to_ptr.vmem [resolvable:$true] %s150_s29 }
  0x12   : > { %p1608_p13 = scmp.ne.s32.totalorder %s2312_s1, %s1607_s7  ;;  %p1614_p3 = scmp.lt.u32.totalorder %s1607_s7, %s2312_s1 }
  0x13   : > { %p1794_p12 = pnand %p2316_p9, %p1555_p11 }
  0x15   : > { %p1609_p0 = pneg %p1794_p12 }
  0x17   : > { %p1610_p1 = pnand %p1609_p0, %p1608_p13 }
  0x19   : > { %p1611_p2 = pneg %p1610_p1 }
  0x1b   : > { %p1616_p4 = pnand %p1614_p3, %p1611_p2 }
  0x1d   : > { %1619 = shalt.err (!%p1616_p4)
}
  0x1e   : > { %s1620_s12 = scalar_lea.vmem %s151_s29, 1536  ;;  %p1628_p9 = scmp.lt.s32.totalorder %s151_s29, %s151_s29 }
  0x1f   : > { %p1621_p7 = scmp.ne.s32.totalorder %s151_s29, %s1620_s12  ;;  %p1629_p6 = scmp.lt.s32.totalorder %s1620_s12, %s1620_s12 }
  0x21   : > { %p1623_p8 = pnand %p1621_p7, %p1609_p0  ;;  %p1630_p5 = por %p1629_p6, %p1628_p9 }
  0x23   : > { %p1624_p11 = pneg %p1623_p8 }
  0x25   : > { %p1631_p10 = pnand %p1630_p5, %p1624_p11 }
  0x27   : > { %1634 = shalt.err (!%p1631_p10)
}
  0x28   : > { %s1704_s13 = smov 384   ;;  %s1705_s14 = smov 24  }
  0x29   : > { %1558 = dma.hbm_to_vmem [thread:$0]  (!%p1794_p12), %s2312_s1, 1536, %s151_s29, [#allocation3], %s1704_s13, %s1704_s13, %s1705_s14  }
  0x2a   : > { %p2322_p13 = scmp.ne.s32.totalorder %s2320_s27, 0 }
  0x2b   : > { %p2323_p1 = scmp.eq.s32.totalorder (!%p2322_p13), %s1758_s19, 0 }
  0x2c   : > { %189 = sbr.rel (%p2322_p13) target bundleno = 789 (0x315), region = 36 }
  0x33   : > { %1680 = dma.done.wait (%p2323_p1), [#allocation3], 1536   ;;  %p2324_p0 = pmov %p2323_p1 }
  0x34   : > { %s1821_s23 = smul.u32 13, %s1758_s19  ;;  %v1706_v0 = vmov 0.0   ;;  %v1707_v1 = vmov 0.0|0.0   ;;  %v253_v2 = vld [vmem:[#allocation2 + $0x8] sm:$0xff]  ;;  %v256_v3 = vld [vmem:[#allocation2 + $0x20] sm:$0xff]  ;;  %v255_v6 = vld [vmem:[#allocation2 + $0x18] sm:$0xff] }
  0x35   : > { %1682 = vsyncadd (%p2324_p0), [#allocation3], 4294965760  ;;  %368 = vmatprep.mubr.f32.mxu0 %v1706_v0  ;;  %1455 = vmatprep.subr.bf16.mxu1 %v1707_v1  ;;  %v252_v4 = vld [vmem:[#allocation2] sm:$0xff]  ;;  %v1447_v5 = vpack.c.bf16 %v256_v3, %v253_v2  ;;  %v259_v7 = vld [vmem:[#allocation2 + $0x38] sm:$0xff]  ;;  %vm264_vm0 = vcmask 261120   ;;  %vm1708_vm1 = vmmov 0  }
  0x36   : > { %p224_p5 = scmp.lt.s32.totalorder %s1821_s23, 24  ;;  %v262_v8 = vld [vmem:[#allocation2 + $0x50] sm:$0xff]  ;;  %v1449_v9 = vpack.c.bf16 %v255_v6, %v252_v4  ;;  %v261_v12 = vld [vmem:[#allocation2 + $0x48] sm:$0xff]  ;;  %v639_v14 = vld [vmem:[%s2313_s2] sm:$0xff]  ;;  %1266 = vmatprep.mubr.msk.f32.mxu1 %vm1708_vm1, %v1706_v0  ;;  %p2325_p6 = scmp.ne.s32.totalorder %s2318_s25, 0 }
  0x37   : > { %v1451_v10 = vpack.c.bf16 %v262_v8, %v259_v7  ;;  %v258_v11 = vld [vmem:[#allocation2 + $0x30] sm:$0xff]  ;;  %1448 = vmatprep.subr.bf16.mxu0 %v1447_v5  ;;  %v640_v15 = vld [vmem:[%s2313_s2 + $0x8] sm:$0xff]  ;;  %v641_v18 = vld [vmem:[%s2313_s2 + $0x10] sm:$0xff] }
  0x38   : > { %s225_s27 = scalar_select %p224_p5, %s1821_s23, 24  ;;  %1450 = vmatpush1.bf16.msra.mxu0 %v1449_v9  ;;  %v1453_v13 = vpack.c.bf16 %v261_v12, %v258_v11  ;;  %v1462_v17 = vpack.c.bf16 %v640_v15, %v639_v14  ;;  %v642_v19 = vld [vmem:[%s2313_s2 + $0x18] sm:$0xff]  ;;  %v643_v22 = vld [vmem:[%s2313_s2 + $0x20] sm:$0xff]  ;;  %v644_v23 = vld [vmem:[%s2313_s2 + $0x28] sm:$0xff] }
  0x39   : > { %1452 = vmatprep.subr.bf16.mxu0 %v1451_v10  ;;  %v1465_v21 = vpack.c.bf16 %v642_v19, %v641_v18  ;;  %v1468_v25 = vpack.c.bf16 %v644_v23, %v643_v22  ;;  %v645_v26 = vld [vmem:[%s2313_s2 + $0x30] sm:$0xff]  ;;  %v646_v27 = vld [vmem:[%s2313_s2 + $0x38] sm:$0xff]  ;;  %v647_v30 = vld [vmem:[%s2313_s2 + $0x40] sm:$0xff] }
  0x3a   : > { %s1130_s28 = sshll.u32 %s225_s27, 3  ;;  %v1471_v29 = vpack.c.bf16 %v646_v27, %v645_v26  ;;  %v648_v31 = vld [vmem:[%s2313_s2 + $0x48] sm:$0xff]  ;;  %v649_v34 = vld [vmem:[%s2313_s2 + $0x50] sm:$0xff]  ;;  %v650_v35 = vld [vmem:[%s2313_s2 + $0x58] sm:$0xff]  ;;  %s1037_s27 = ssub.s32 (%p2325_p6), 25, %s1821_s23 }
  0x3b   : > { %s1830_s5 = scalar_lea.vmem %s2311_s0, %s1130_s28  ;;  %v1474_v33 = vpack.c.bf16 %v648_v31, %v647_v30  ;;  %v1477_v37 = vpack.c.bf16 %v650_v35, %v649_v34  ;;  %v651_v38 = vld [vmem:[%s2313_s2 + $0x60] sm:$0xff]  ;;  %v652_v39 = vld [vmem:[%s2313_s2 + $0x68] sm:$0xff]  ;;  %v653_v42 = vld [vmem:[%s2313_s2 + $0x70] sm:$0xff]  ;;  %p1038_p9 = scmp.lt.s32.totalorder (%p2325_p6), %s1037_s27, 13 }
  0x3c   : > { %1454 = vmatpush1.bf16.msra.mxu0 %v1453_v13  ;;  %v1839_v16 = vld [vmem:[%s1830_s5] sm:$0xff]  ;;  %v1852_v20 = vld [vmem:[%s1830_s5 + $0x8] sm:$0xff]  ;;  %v1865_v24 = vld [vmem:[%s1830_s5 + $0x10] sm:$0xff]  ;;  %v1480_v41 = vpack.c.bf16 %v652_v39, %v651_v38 }
  0x3d   : > { %1461 = vmatprep.subr.bf16.mxu0 %v1707_v1  ;;  %v1878_v28 = vld [vmem:[%s1830_s5 + $0x18] sm:$0xff]  ;;  %v1891_v32 = vld [vmem:[%s1830_s5 + $0x20] sm:$0xff]  ;;  %v1904_v36 = vld [vmem:[%s1830_s5 + $0x28] sm:$0xff] }
  0x3e   : > { %v1917_v40 = vld [vmem:[%s1830_s5 + $0x30] sm:$0xff]  ;;  %v654_v43 = vld [vmem:[%s2313_s2 + $0x78] sm:$0xff]  ;;  %v1937_v46 = vld [vmem:[%s1830_s5 + $0x40] sm:$0xff] }
  0x3f   : > { %1131 = vmatmul.mubr.msk.f32.vlgmr.msra.gmra.mrb[0].mxu0 %vm264_vm0, %v1839_v16  ;;  %v1930_v44 = vld [vmem:[%s1830_s5 + $0x38] sm:$0xff]  ;;  %v1483_v45 = vpack.c.bf16 %v654_v43, %v653_v42  ;;  %v1943_v47 = vld [vmem:[%s1830_s5 + $0x48] sm:$0xff]  ;;  %v1949_v48 = vld [vmem:[%s1830_s5 + $0x50] sm:$0xff] }
  0x40   : > { %374 = vmatprep.mubr.f32.mxu0 %v1706_v0  ;;  %1463 = vmatpush3.bf16.msra.mxu0 %v1462_v17  ;;  %v1955_v49 = vld [vmem:[%s1830_s5 + $0x58] sm:$0xff]  ;;  %v1961_v50 = vld [vmem:[%s1830_s5 + $0x60] sm:$0xff]  ;;  %v257_v52 = vld [vmem:[#allocation2 + $0x28] sm:$0xff]  ;;  %s216_s5 = sand.u32 1, %s1693_s16  }
  0x41   : > { %1464 = vmatprep.subr.bf16.mxu0 %v1707_v1  ;;  %v254_v51 = vld [vmem:[#allocation2 + $0x10] sm:$0xff]  ;;  %v260_v53 = vld [vmem:[#allocation2 + $0x40] sm:$0xff]  ;;  %v263_v55 = vld [vmem:[#allocation2 + $0x58] sm:$0xff]  ;;  %s1548_s8 = smul.u32 312, %s216_s5  ;;  %s2250_s22 = scalar_lea.sflag [#allocation4], %s216_s5 }
  0x42   : > { %v1456_v54 = vpack.c.bf16 %v257_v52, %v254_v51  ;;  %v1459_v56 = vpack.c.bf16 %v263_v55, %v260_v53  ;;  %v1160_v57 = vld [vmem:[%s2313_s2 + $0x80] sm:$0xff]  ;;  %v1161_v58 = vld [vmem:[%s2313_s2 + $0x88] sm:$0xff]  ;;  %v1162_v60 = vld [vmem:[%s2313_s2 + $0x90] sm:$0xff] }
  0x43   : > { %1132 = vmatmul.mubr.msk.f32.gmra.mrb[2].mxu0 %vm264_vm0, %v1852_v20  ;;  %v1486_v59 = vpack.c.bf16 %v1161_v58, %v1160_v57  ;;  %v1163_v61 = vld [vmem:[%s2313_s2 + $0x98] sm:$0xff]  ;;  %v1164_v63 = vld [vmem:[%s2313_s2 + $0xa0] sm:$0xff]  ;;  %v1165_v2 = vld [vmem:[%s2313_s2 + $0xa8] sm:$0xff]  ;;  %s2089_s11 = scalar_lea.vmem [#allocation5], %s1548_s8 }
  0x44   : > { %380 = vmatprep.mubr.f32.mxu0 %v1706_v0  ;;  %1466 = vmatpush3.bf16.msra.mxu0 %v1465_v21  ;;  %v1489_v62 = vpack.c.bf16 %v1163_v61, %v1162_v60  ;;  %v1492_v3 = vpack.c.bf16 %v1165_v2, %v1164_v63  ;;  %v1166_v4 = vld [vmem:[%s2313_s2 + $0xb0] sm:$0xff]  ;;  %v1167_v5 = vld [vmem:[%s2313_s2 + $0xb8] sm:$0xff]  ;;  %v1168_v7 = vld [vmem:[%s2313_s2 + $0xc0] sm:$0xff] }
  0x45   : > { %1467 = vmatprep.subr.bf16.mxu0 %v1707_v1  ;;  %1457 = vmatpush3.bf16.msra.mxu1 %v1456_v54  ;;  %v1495_v6 = vpack.c.bf16 %v1167_v5, %v1166_v4  ;;  %v1169_v8 = vld [vmem:[%s2313_s2 + $0xc8] sm:$0xff]  ;;  %v1170_v10 = vld [vmem:[%s2313_s2 + $0xd0] sm:$0xff]  ;;  %v1171_v11 = vld [vmem:[%s2313_s2 + $0xd8] sm:$0xff] }
  0x46   : > { %1458 = vmatprep.subr.bf16.mxu1 %v1707_v1  ;;  %v1498_v9 = vpack.c.bf16 %v1169_v8, %v1168_v7  ;;  %v1501_v12 = vpack.c.bf16 %v1171_v11, %v1170_v10  ;;  %v1172_v13 = vld [vmem:[%s2313_s2 + $0xe0] sm:$0xff]  ;;  %v1173_v14 = vld [vmem:[%s2313_s2 + $0xe8] sm:$0xff]  ;;  %v1175_v17 = vld [vmem:[%s2313_s2 + $0xf8] sm:$0xff] }
  0x47   : > { %1133 = vmatmul.mubr.msk.f32.gmra.mrb[4].mxu0 %vm264_vm0, %v1865_v24  ;;  %v1504_v15 = vpack.c.bf16 %v1173_v14, %v1172_v13 }
  0x48   : > { %386 = vmatprep.mubr.f32.mxu0 %v1706_v0  ;;  %1469 = vmatpush3.bf16.msra.mxu0 %v1468_v25 }
  0x49   : > { %1470 = vmatprep.subr.bf16.mxu0 %v1707_v1  ;;  %1460 = vmatpush3.bf16.msra.mxu1 %v1459_v56 }
  0x4a   : > { %1485 = vmatprep.subr.bf16.mxu1 %v1707_v1 }
  0x4b   : > { %1134 = vmatmul.mubr.msk.f32.gmra.mrb[6].mxu0 %vm264_vm0, %v1878_v28 }
  0x4c   : > { %392 = vmatprep.mubr.f32.mxu0 %v1706_v0  ;;  %1472 = vmatpush3.bf16.msra.mxu0 %v1471_v29 }
  0x4d   : > { %1473 = vmatprep.subr.bf16.mxu0 %v1707_v1  ;;  %1267 = vmatmul.mubr.msk.f32.vlgmr.msra.gmra.mrb[0].mxu1 %vm264_vm0, %v1839_v16  ;;  %v1174_v16 = vld [vmem:[%s2313_s2 + $0xf0] sm:$0xff] }
  0x4e   : > { %1487 = vmatpush3.bf16.msra.mxu1 %v1486_v59  ;;  %1269 = vmatprep.mubr.msk.f32.mxu1 %vm1708_vm1, %v1706_v0  ;;  %v1507_v18 = vpack.c.bf16 %v1175_v17, %v1174_v16 }
  0x4f   : > { %1135 = vmatmul.mubr.msk.f32.gmra.mrb[8].mxu0 %vm264_vm0, %v1891_v32  ;;  %1488 = vmatprep.subr.bf16.mxu1 %v1707_v1 }
  0x50   : > { %398 = vmatprep.mubr.f32.mxu0 %v1706_v0  ;;  %1475 = vmatpush3.bf16.msra.mxu0 %v1474_v33 }
  0x51   : > { %1476 = vmatprep.subr.bf16.mxu0 %v1707_v1  ;;  %1270 = vmatmul.mubr.msk.f32.gmra.mrb[2].mxu1 %vm264_vm0, %v1852_v20 }
  0x52   : > { %1272 = vmatprep.mubr.msk.f32.mxu1 %vm1708_vm1, %v1706_v0  ;;  %1490 = vmatpush3.bf16.msra.mxu1 %v1489_v62 }
  0x53   : > { %1136 = vmatmul.mubr.msk.f32.gmra.mrb[10].mxu0 %vm264_vm0, %v1904_v36  ;;  %1491 = vmatprep.subr.bf16.mxu1 %v1707_v1 }
  0x54   : > { %404 = vmatprep.mubr.f32.mxu0 %v1706_v0  ;;  %1478 = vmatpush3.bf16.msra.mxu0 %v1477_v37 }
  0x55   : > { %1479 = vmatprep.subr.bf16.mxu0 %v1707_v1  ;;  %1273 = vmatmul.mubr.msk.f32.gmra.mrb[4].mxu1 %vm264_vm0, %v1865_v24 }
  0x56   : > { %1275 = vmatprep.mubr.msk.f32.mxu1 %vm1708_vm1, %v1706_v0  ;;  %1493 = vmatpush3.bf16.msra.mxu1 %v1492_v3 }
  0x57   : > { %1137 = vmatmul.mubr.msk.f32.gmra.mrb[12].mxu0 %vm264_vm0, %v1917_v40  ;;  %1494 = vmatprep.subr.bf16.mxu1 %v1707_v1 }
  0x58   : > { %410 = vmatprep.mubr.f32.mxu0 %v1706_v0  ;;  %1481 = vmatpush3.bf16.msra.mxu0 %v1480_v41 }
  0x59   : > { %1482 = vmatprep.subr.bf16.mxu0 %v1707_v1  ;;  %1276 = vmatmul.mubr.msk.f32.gmra.mrb[6].mxu1 %vm264_vm0, %v1878_v28 }
  0x5a   : > { %1278 = vmatprep.mubr.msk.f32.mxu1 %vm1708_vm1, %v1706_v0  ;;  %1496 = vmatpush3.bf16.msra.mxu1 %v1495_v6 }
  0x5b   : > { %1138 = vmatmul.mubr.msk.f32.gmra.mrb[14].mxu0 %vm264_vm0, %v1930_v44  ;;  %1497 = vmatprep.subr.bf16.mxu1 %v1707_v1 }
  0x5c   : > { %416 = vmatprep.mubr.f32.mxu0 %v1706_v0  ;;  %1484 = vmatpush3.bf16.msra.mxu0 %v1483_v45 }
  0x5d   : > { %1279 = vmatmul.mubr.msk.f32.gmra.mrb[8].mxu1 %vm264_vm0, %v1891_v32 }
  0x5e   : > { %1281 = vmatprep.mubr.msk.f32.mxu1 %vm1708_vm1, %v1706_v0  ;;  %1499 = vmatpush3.bf16.msra.mxu1 %v1498_v9  ;;  %v2167_v9 = vld [vmem:[%s2314_s3 + $0x1] ss:$0 sm:$0xff] }
  0x5f   : > { %1139 = vmatmul.mubr.msk.f32.gmra.mrb[16].mxu0 %vm264_vm0, %v1937_v46  ;;  %1500 = vmatprep.subr.bf16.mxu1 %v1707_v1 }
  0x60   : > { %422 = vmatprep.mubr.f32.mxu0 %v1706_v0 }
  0x61   : > { %1282 = vmatmul.mubr.msk.f32.gmra.mrb[10].mxu1 %vm264_vm0, %v1904_v36 }
  0x62   : > { %1284 = vmatprep.mubr.msk.f32.mxu1 %vm1708_vm1, %v1706_v0  ;;  %1502 = vmatpush3.bf16.msra.mxu1 %v1501_v12 }
  0x63   : > { %1140 = vmatmul.mubr.msk.f32.gmra.mrb[18].mxu0 %vm264_vm0, %v1943_v47  ;;  %1503 = vmatprep.subr.bf16.mxu1 %v1707_v1 }
  0x64   : > { %428 = vmatprep.mubr.f32.mxu0 %v1706_v0 }
  0x65   : > { %1285 = vmatmul.mubr.msk.f32.gmra.mrb[12].mxu1 %vm264_vm0, %v1917_v40 }
  0x66   : > { %1287 = vmatprep.mubr.msk.f32.mxu1 %vm1708_vm1, %v1706_v0  ;;  %1505 = vmatpush3.bf16.msra.mxu1 %v1504_v15 }
  0x67   : > { %1141 = vmatmul.mubr.msk.f32.gmra.mrb[20].mxu0 %vm264_vm0, %v1949_v48  ;;  %1506 = vmatprep.subr.bf16.mxu1 %v1707_v1  ;;  %v2084_v1 = vld [vmem:[%s2314_s3] ss:$0 sm:$0xff] }
  0x68   : > { %434 = vmatprep.mubr.f32.mxu0 %v1706_v0 }
  0x69   : > { %1288 = vmatmul.mubr.msk.f32.gmra.mrb[14].mxu1 %vm264_vm0, %v1930_v44 }
  0x6a   : > { %1290 = vmatprep.mubr.msk.f32.mxu1 %vm1708_vm1, %v1706_v0  ;;  %1508 = vmatpush3.bf16.msra.mxu1 %v1507_v18 }
  0x6b   : > { %1142 = vmatmul.mubr.msk.f32.gmra.mrb[22].mxu0 %vm264_vm0, %v1955_v49 }
  0x6c   : > { %440 = vmatprep.mubr.f32.mxu0 %v1706_v0 }
  0x6d   : > { %1291 = vmatmul.mubr.msk.f32.gmra.mrb[16].mxu1 %vm264_vm0, %v1937_v46 }
  0x6e   : > { %1293 = vmatprep.mubr.msk.f32.mxu1 %vm1708_vm1, %v1706_v0 }
  0x6f   : > { %1143 = vmatmul.mubr.msk.f32.gmra.mrb[24].mxu0 %vm264_vm0, %v1961_v50 }
  0x70   : > { %1337 = vmatprep.mubr.msk.f32.mxu0 %vm1708_vm1, %v1706_v0 }
  0x71   : > { %1294 = vmatmul.mubr.msk.f32.gmra.mrb[18].mxu1 %vm264_vm0, %v1943_v47 }
  0x72   : > { %1296 = vmatprep.mubr.msk.f32.mxu1 %vm1708_vm1, %v1706_v0 }
  0x75   : > { %1297 = vmatmul.mubr.msk.f32.gmra.mrb[20].mxu1 %vm264_vm0, %v1949_v48 }
  0x76   : > { %1299 = vmatprep.mubr.msk.f32.mxu1 %vm1708_vm1, %v1706_v0 }
  0x79   : > { %1300 = vmatmul.mubr.msk.f32.gmra.mrb[22].mxu1 %vm264_vm0, %v1955_v49 }
  0x7a   : > { %1302 = vmatprep.mubr.msk.f32.mxu1 %vm1708_vm1, %v1706_v0 }
  0x7d   : > { %1303 = vmatmul.mubr.msk.f32.gmra.mrb[24].mxu1 %vm264_vm0, %v1961_v50 }
  0x7e   : > { %1408 = vmatprep.mubr.msk.f32.mxu1 %vm1708_vm1, %v1706_v0 }
 0x112   : > { %v370_v19 = vpop.f32.mrb[0].mxu0 }
 0x113   : > { %v582_v20 = vadd.f32 %v2084_v1, %v370_v19  ;;  %v2087_v21 = vpop.f32.mrb[1].mxu0 }
 0x114   : > { %v626_v10 = vadd.f32 %v2167_v9, %v2087_v21 }
 0x115   : > { %v595_v22 = vmax.f32 %v582_v20, 0.0 }
 0x116   : > { %v376_v23 = vpop.f32.mrb[2].mxu0 }
 0x117   : > { %608 = vst [vmem:[%s2089_s11] sm:$0xff] %v595_v22  ;;  %v583_v24 = vadd.f32 %v2084_v1, %v376_v23  ;;  %v2093_v25 = vpop.f32.mrb[3].mxu0  ;;  %1338 = vmatmul.mubr.f32.vlgmr.msra.gmra.mrb[26].mxu0 %v595_v22 }
 0x118   : > { %1340 = vmatprep.mubr.msk.f32.mxu0 %vm1708_vm1, %v1706_v0  ;;  %v627_v14 = vadd.f32 %v2167_v9, %v2093_v25 }
 0x119   : > { %v596_v26 = vmax.f32 %v583_v24, 0.0 }
 0x11a   : > { %v382_v27 = vpop.f32.mrb[4].mxu0 }
 0x11b   : > { %609 = vst [vmem:[%s2089_s11 + $0x18] sm:$0xff] %v596_v26  ;;  %v584_v28 = vadd.f32 %v2084_v1, %v382_v27  ;;  %v2099_v29 = vpop.f32.mrb[5].mxu0  ;;  %1341 = vmatmul.mubr.f32.gmra.mrb[28].mxu0 %v596_v26 }
 0x11c   : > { %1343 = vmatprep.mubr.msk.f32.mxu0 %vm1708_vm1, %v1706_v0 }
 0x11d   : > { %v597_v30 = vmax.f32 %v584_v28, 0.0 }
 0x11e   : > { %v388_v31 = vpop.f32.mrb[6].mxu0 }
 0x11f   : > { %610 = vst [vmem:[%s2089_s11 + $0x30] sm:$0xff] %v597_v30  ;;  %v585_v32 = vadd.f32 %v2084_v1, %v388_v31  ;;  %v2105_v33 = vpop.f32.mrb[7].mxu0  ;;  %1344 = vmatmul.mubr.f32.gmra.mrb[30].mxu0 %v597_v30 }
 0x120   : > { %1346 = vmatprep.mubr.msk.f32.mxu0 %vm1708_vm1, %v1706_v0  ;;  %v629_v23 = vadd.f32 %v2167_v9, %v2105_v33 }
 0x121   : > { %v598_v34 = vmax.f32 %v585_v32, 0.0 }
 0x122   : > { %v394_v35 = vpop.f32.mrb[8].mxu0 }
 0x123   : > { %611 = vst [vmem:[%s2089_s11 + $0x48] sm:$0xff] %v598_v34  ;;  %v586_v36 = vadd.f32 %v2084_v1, %v394_v35  ;;  %v2111_v37 = vpop.f32.mrb[9].mxu0  ;;  %1347 = vmatmul.mubr.f32.gmra.mrb[32].mxu0 %v598_v34 }
 0x124   : > { %1349 = vmatprep.mubr.msk.f32.mxu0 %vm1708_vm1, %v1706_v0  ;;  %v630_v28 = vadd.f32 %v2167_v9, %v2111_v37 }
 0x125   : > { %v599_v38 = vmax.f32 %v586_v36, 0.0 }
 0x126   : > { %v400_v39 = vpop.f32.mrb[10].mxu0 }
 0x127   : > { %612 = vst [vmem:[%s2089_s11 + $0x60] sm:$0xff] %v599_v38  ;;  %v587_v40 = vadd.f32 %v2084_v1, %v400_v39  ;;  %v2117_v41 = vpop.f32.mrb[11].mxu0  ;;  %1350 = vmatmul.mubr.f32.gmra.mrb[34].mxu0 %v599_v38 }
 0x128   : > { %1352 = vmatprep.mubr.msk.f32.mxu0 %vm1708_vm1, %v1706_v0  ;;  %v631_v33 = vadd.f32 %v2167_v9, %v2117_v41 }
 0x129   : > { %v600_v42 = vmax.f32 %v587_v40, 0.0 }
 0x12a   : > { %v406_v43 = vpop.f32.mrb[12].mxu0 }
 0x12b   : > { %613 = vst [vmem:[%s2089_s11 + $0x78] sm:$0xff] %v600_v42  ;;  %v588_v44 = vadd.f32 %v2084_v1, %v406_v43  ;;  %v2123_v45 = vpop.f32.mrb[13].mxu0  ;;  %1353 = vmatmul.mubr.f32.gmra.mrb[36].mxu0 %v600_v42 }
 0x12c   : > { %1355 = vmatprep.mubr.msk.f32.mxu0 %vm1708_vm1, %v1706_v0  ;;  %v632_v37 = vadd.f32 %v2167_v9, %v2123_v45 }
 0x12d   : > { %v601_v46 = vmax.f32 %v588_v44, 0.0 }
 0x12e   : > { %v412_v47 = vpop.f32.mrb[14].mxu0 }
 0x12f   : > { %614 = vst [vmem:[%s2089_s11 + $0x90] sm:$0xff] %v601_v46  ;;  %v589_v48 = vadd.f32 %v2084_v1, %v412_v47  ;;  %v2129_v49 = vpop.f32.mrb[15].mxu0  ;;  %1356 = vmatmul.mubr.f32.gmra.mrb[38].mxu0 %v601_v46 }
 0x130   : > { %1358 = vmatprep.mubr.msk.f32.mxu0 %vm1708_vm1, %v1706_v0  ;;  %v633_v41 = vadd.f32 %v2167_v9, %v2129_v49 }
 0x131   : > { %v602_v50 = vmax.f32 %v589_v48, 0.0 }
 0x132   : > { %v418_v51 = vpop.f32.mrb[16].mxu0 }
 0x133   : > { %615 = vst [vmem:[%s2089_s11 + $0xa8] sm:$0xff] %v602_v50  ;;  %v590_v52 = vadd.f32 %v2084_v1, %v418_v51  ;;  %v2135_v53 = vpop.f32.mrb[17].mxu0  ;;  %1359 = vmatmul.mubr.f32.gmra.mrb[40].mxu0 %v602_v50 }
 0x134   : > { %1361 = vmatprep.mubr.msk.f32.mxu0 %vm1708_vm1, %v1706_v0  ;;  %v634_v45 = vadd.f32 %v2167_v9, %v2135_v53 }
 0x135   : > { %v603_v54 = vmax.f32 %v590_v52, 0.0 }
 0x136   : > { %v424_v55 = vpop.f32.mrb[18].mxu0 }
 0x137   : > { %616 = vst [vmem:[%s2089_s11 + $0xc0] sm:$0xff] %v603_v54  ;;  %v591_v56 = vadd.f32 %v2084_v1, %v424_v55  ;;  %v2141_v57 = vpop.f32.mrb[19].mxu0  ;;  %1362 = vmatmul.mubr.f32.gmra.mrb[42].mxu0 %v603_v54 }
 0x138   : > { %1364 = vmatprep.mubr.msk.f32.mxu0 %vm1708_vm1, %v1706_v0  ;;  %v635_v49 = vadd.f32 %v2167_v9, %v2141_v57 }
 0x139   : > { %v604_v58 = vmax.f32 %v591_v56, 0.0 }
 0x13a   : > { %v430_v59 = vpop.f32.mrb[20].mxu0 }
 0x13b   : > { %617 = vst [vmem:[%s2089_s11 + $0xd8] sm:$0xff] %v604_v58  ;;  %v592_v60 = vadd.f32 %v2084_v1, %v430_v59  ;;  %v2147_v61 = vpop.f32.mrb[21].mxu0  ;;  %1365 = vmatmul.mubr.f32.gmra.mrb[44].mxu0 %v604_v58 }
 0x13c   : > { %1367 = vmatprep.mubr.msk.f32.mxu0 %vm1708_vm1, %v1706_v0  ;;  %v636_v53 = vadd.f32 %v2167_v9, %v2147_v61 }
 0x13d   : > { %v605_v62 = vmax.f32 %v592_v60, 0.0 }
 0x13e   : > { %v436_v63 = vpop.f32.mrb[22].mxu0 }
 0x13f   : > { %618 = vst [vmem:[%s2089_s11 + $0xf0] sm:$0xff] %v605_v62  ;;  %v593_v2 = vadd.f32 %v2084_v1, %v436_v63  ;;  %v2153_v3 = vpop.f32.mrb[23].mxu0  ;;  %1368 = vmatmul.mubr.f32.gmra.mrb[46].mxu0 %v605_v62 }
 0x140   : > { %1370 = vmatprep.mubr.msk.f32.mxu0 %vm1708_vm1, %v1706_v0  ;;  %v637_v57 = vadd.f32 %v2167_v9, %v2153_v3 }
 0x141   : > { %v606_v4 = vmax.f32 %v593_v2, 0.0 }
 0x142   : > { %v442_v5 = vpop.f32.mrb[24].mxu0 }
 0x143   : > { %619 = vst [vmem:[%s2089_s11 + $0x108] sm:$0xff] %v606_v4  ;;  %v594_v6 = vadd.f32 %v2084_v1, %v442_v5  ;;  %v2159_v7 = vpop.f32.mrb[25].mxu0  ;;  %1371 = vmatmul.mubr.f32.gmra.mrb[48].mxu0 %v606_v4  ;;  %v628_v1 = vadd.f32 %v2167_v9, %v2099_v29 }
 0x144   : > { %1373 = vmatprep.mubr.msk.f32.mxu0 %vm1708_vm1, %v1706_v0  ;;  %v638_v61 = vadd.f32 %v2167_v9, %v2159_v7 }
 0x145   : > { %v607_v8 = vmax.f32 %v594_v6, 0.0 }
 0x147   : > { %620 = vst [vmem:[%s2089_s11 + $0x120] sm:$0xff] %v607_v8  ;;  %1374 = vmatmul.mubr.f32.gmra.mrb[50].mxu0 %v607_v8 }
 0x1ea   : > { %v721_v11 = vpop.f32.mrb[26].mxu0 }
 0x1eb   : > { %v785_v12 = vadd.f32 %v721_v11, %v626_v10  ;;  %v1339_v13 = vpop.f32.mrb[27].mxu0 }
 0x1ed   : > { %v798_v15 = vmax.f32 %v785_v12, 0.0 }
 0x1ee   : > { %v726_v16 = vpop.f32.mrb[28].mxu0 }
 0x1ef   : > { %811 = vst [vmem:[%s2089_s11 + $0x8] sm:$0xff] %v798_v15  ;;  %v786_v17 = vadd.f32 %v726_v16, %v627_v14  ;;  %v1342_v18 = vpop.f32.mrb[29].mxu0  ;;  %1409 = vmatmul.mubr.f32.vlgmr.msra.gmra.mrb[0].mxu1 %v798_v15  ;;  %v1159_v14 = vld [vmem:[%s2314_s3 + $0x2] ss:$0 sm:$0xff] }
 0x1f0   : > { %1411 = vmatprep.mubr.msk.f32.mxu1 %vm1708_vm1, %v1706_v0 }
 0x1f1   : > { %v799_v19 = vmax.f32 %v786_v17, 0.0 }
 0x1f2   : > { %v731_v20 = vpop.f32.mrb[30].mxu0 }
 0x1f3   : > { %812 = vst [vmem:[%s2089_s11 + $0x20] sm:$0xff] %v799_v19  ;;  %v787_v21 = vadd.f32 %v731_v20, %v628_v1  ;;  %v1345_v22 = vpop.f32.mrb[31].mxu0  ;;  %1412 = vmatmul.mubr.f32.gmra.mrb[2].mxu1 %v799_v19 }
 0x1f4   : > { %1414 = vmatprep.mubr.msk.f32.mxu1 %vm1708_vm1, %v1706_v0 }
 0x1f5   : > { %v800_v24 = vmax.f32 %v787_v21, 0.0 }
 0x1f6   : > { %v736_v25 = vpop.f32.mrb[32].mxu0 }
 0x1f7   : > { %813 = vst [vmem:[%s2089_s11 + $0x38] sm:$0xff] %v800_v24  ;;  %v788_v26 = vadd.f32 %v736_v25, %v629_v23  ;;  %v1348_v27 = vpop.f32.mrb[33].mxu0  ;;  %1415 = vmatmul.mubr.f32.gmra.mrb[4].mxu1 %v800_v24 }
 0x1f8   : > { %1417 = vmatprep.mubr.msk.f32.mxu1 %vm1708_vm1, %v1706_v0 }
 0x1f9   : > { %v801_v29 = vmax.f32 %v788_v26, 0.0 }
 0x1fa   : > { %v741_v30 = vpop.f32.mrb[34].mxu0 }
 0x1fb   : > { %814 = vst [vmem:[%s2089_s11 + $0x50] sm:$0xff] %v801_v29  ;;  %v789_v31 = vadd.f32 %v741_v30, %v630_v28  ;;  %v1351_v32 = vpop.f32.mrb[35].mxu0  ;;  %1418 = vmatmul.mubr.f32.gmra.mrb[6].mxu1 %v801_v29 }
 0x1fc   : > { %1420 = vmatprep.mubr.msk.f32.mxu1 %vm1708_vm1, %v1706_v0 }
 0x1fd   : > { %v802_v34 = vmax.f32 %v789_v31, 0.0 }
 0x1fe   : > { %v746_v35 = vpop.f32.mrb[36].mxu0 }
 0x1ff   : > { %815 = vst [vmem:[%s2089_s11 + $0x68] sm:$0xff] %v802_v34  ;;  %v790_v36 = vadd.f32 %v746_v35, %v631_v33  ;;  %v1354_v38 = vpop.f32.mrb[37].mxu0  ;;  %1421 = vmatmul.mubr.f32.gmra.mrb[8].mxu1 %v802_v34 }
 0x200   : > { %1423 = vmatprep.mubr.msk.f32.mxu1 %vm1708_vm1, %v1706_v0 }
 0x201   : > { %v803_v39 = vmax.f32 %v790_v36, 0.0 }
 0x202   : > { %v751_v40 = vpop.f32.mrb[38].mxu0 }
 0x203   : > { %816 = vst [vmem:[%s2089_s11 + $0x80] sm:$0xff] %v803_v39  ;;  %v791_v42 = vadd.f32 %v751_v40, %v632_v37  ;;  %v1357_v43 = vpop.f32.mrb[39].mxu0  ;;  %1424 = vmatmul.mubr.f32.gmra.mrb[10].mxu1 %v803_v39 }
 0x204   : > { %1426 = vmatprep.mubr.msk.f32.mxu1 %vm1708_vm1, %v1706_v0 }
 0x205   : > { %v804_v44 = vmax.f32 %v791_v42, 0.0 }
 0x206   : > { %v756_v46 = vpop.f32.mrb[40].mxu0 }
 0x207   : > { %817 = vst [vmem:[%s2089_s11 + $0x98] sm:$0xff] %v804_v44  ;;  %v792_v47 = vadd.f32 %v756_v46, %v633_v41  ;;  %v1360_v48 = vpop.f32.mrb[41].mxu0  ;;  %1427 = vmatmul.mubr.f32.gmra.mrb[12].mxu1 %v804_v44 }
 0x208   : > { %1429 = vmatprep.mubr.msk.f32.mxu1 %vm1708_vm1, %v1706_v0 }
 0x209   : > { %v805_v50 = vmax.f32 %v792_v47, 0.0 }
 0x20a   : > { %v761_v51 = vpop.f32.mrb[42].mxu0 }
 0x20b   : > { %818 = vst [vmem:[%s2089_s11 + $0xb0] sm:$0xff] %v805_v50  ;;  %v793_v52 = vadd.f32 %v761_v51, %v634_v45  ;;  %v1363_v54 = vpop.f32.mrb[43].mxu0  ;;  %1430 = vmatmul.mubr.f32.gmra.mrb[14].mxu1 %v805_v50 }
 0x20c   : > { %1432 = vmatprep.mubr.msk.f32.mxu1 %vm1708_vm1, %v1706_v0 }
 0x20d   : > { %v806_v55 = vmax.f32 %v793_v52, 0.0 }
 0x20e   : > { %v766_v56 = vpop.f32.mrb[44].mxu0 }
 0x20f   : > { %819 = vst [vmem:[%s2089_s11 + $0xc8] sm:$0xff] %v806_v55  ;;  %v794_v58 = vadd.f32 %v766_v56, %v635_v49  ;;  %v1366_v59 = vpop.f32.mrb[45].mxu0  ;;  %1433 = vmatmul.mubr.f32.gmra.mrb[16].mxu1 %v806_v55 }
 0x210   : > { %1435 = vmatprep.mubr.msk.f32.mxu1 %vm1708_vm1, %v1706_v0 }
 0x211   : > { %v807_v60 = vmax.f32 %v794_v58, 0.0 }
 0x212   : > { %v771_v62 = vpop.f32.mrb[46].mxu0 }
 0x213   : > { %820 = vst [vmem:[%s2089_s11 + $0xe0] sm:$0xff] %v807_v60  ;;  %v795_v63 = vadd.f32 %v771_v62, %v636_v53  ;;  %v1369_v2 = vpop.f32.mrb[47].mxu0  ;;  %1436 = vmatmul.mubr.f32.gmra.mrb[18].mxu1 %v807_v60 }
 0x214   : > { %1438 = vmatprep.mubr.msk.f32.mxu1 %vm1708_vm1, %v1706_v0 }
 0x215   : > { %v808_v4 = vmax.f32 %v795_v63, 0.0 }
 0x216   : > { %v776_v5 = vpop.f32.mrb[48].mxu0 }
 0x217   : > { %821 = vst [vmem:[%s2089_s11 + $0xf8] sm:$0xff] %v808_v4  ;;  %v796_v6 = vadd.f32 %v776_v5, %v637_v57  ;;  %v1372_v8 = vpop.f32.mrb[49].mxu0  ;;  %1439 = vmatmul.mubr.f32.gmra.mrb[20].mxu1 %v808_v4 }
 0x218   : > { %1441 = vmatprep.mubr.msk.f32.mxu1 %vm1708_vm1, %v1706_v0 }
 0x219   : > { %v809_v10 = vmax.f32 %v796_v6, 0.0 }
 0x21a   : > { %v781_v11 = vpop.f32.mrb[50].mxu0 }
 0x21b   : > { %822 = vst [vmem:[%s2089_s11 + $0x110] sm:$0xff] %v809_v10  ;;  %v797_v12 = vadd.f32 %v781_v11, %v638_v61  ;;  %v1375_v13 = vpop.f32.mrb[51].mxu0  ;;  %1442 = vmatmul.mubr.f32.gmra.mrb[22].mxu1 %v809_v10 }
 0x21c   : > { %1444 = vmatprep.mubr.msk.f32.mxu1 %vm1708_vm1, %v1706_v0 }
 0x21d   : > { %v810_v3 = vmax.f32 %v797_v12, 0.0 }
 0x21f   : > { %823 = vst [vmem:[%s2089_s11 + $0x128] sm:$0xff] %v810_v3  ;;  %1445 = vmatmul.mubr.f32.gmra.mrb[24].mxu1 %v810_v3 }
 0x2c2   : > { %v925_v7 = vpop.f32.mrb[0].mxu1 }
 0x2c3   : > { %v1509_v9 = vadd.f32 %v1159_v14, %v925_v7  ;;  %v1410_v15 = vpop.f32.mrb[1].mxu1 }
 0x2c5   : > { %v1002_v16 = vmax.f32 %v1509_v9, 0.0 }
 0x2c6   : > { %v930_v17 = vpop.f32.mrb[2].mxu1 }
 0x2c7   : > { %1015 = vst [vmem:[%s2089_s11 + $0x10] sm:$0xff] %v1002_v16  ;;  %v1510_v18 = vadd.f32 %v1159_v14, %v930_v17  ;;  %v1413_v1 = vpop.f32.mrb[3].mxu1 }
 0x2c9   : > { %v1003_v19 = vmax.f32 %v1510_v18, 0.0 }
 0x2ca   : > { %v935_v20 = vpop.f32.mrb[4].mxu1 }
 0x2cb   : > { %1016 = vst [vmem:[%s2089_s11 + $0x28] sm:$0xff] %v1003_v19  ;;  %v1511_v0 = vadd.f32 %v1159_v14, %v935_v20  ;;  %v1416_v21 = vpop.f32.mrb[5].mxu1 }
 0x2cd   : > { %v1004_v22 = vmax.f32 %v1511_v0, 0.0 }
 0x2ce   : > { %v940_v23 = vpop.f32.mrb[6].mxu1 }
 0x2cf   : > { %1017 = vst [vmem:[%s2089_s11 + $0x40] sm:$0xff] %v1004_v22  ;;  %v1512_v24 = vadd.f32 %v1159_v14, %v940_v23  ;;  %v1419_v25 = vpop.f32.mrb[7].mxu1 }
 0x2d1   : > { %v1005_v26 = vmax.f32 %v1512_v24, 0.0 }
 0x2d2   : > { %v945_v27 = vpop.f32.mrb[8].mxu1 }
 0x2d3   : > { %1018 = vst [vmem:[%s2089_s11 + $0x58] sm:$0xff] %v1005_v26  ;;  %v1513_v28 = vadd.f32 %v1159_v14, %v945_v27  ;;  %v1422_v29 = vpop.f32.mrb[9].mxu1 }
 0x2d5   : > { %v1006_v30 = vmax.f32 %v1513_v28, 0.0 }
 0x2d6   : > { %v950_v31 = vpop.f32.mrb[10].mxu1 }
 0x2d7   : > { %1019 = vst [vmem:[%s2089_s11 + $0x70] sm:$0xff] %v1006_v30  ;;  %v1514_v32 = vadd.f32 %v1159_v14, %v950_v31  ;;  %v1425_v33 = vpop.f32.mrb[11].mxu1 }
 0x2d9   : > { %v1007_v34 = vmax.f32 %v1514_v32, 0.0 }
 0x2da   : > { %v955_v35 = vpop.f32.mrb[12].mxu1 }
 0x2db   : > { %1020 = vst [vmem:[%s2089_s11 + $0x88] sm:$0xff] %v1007_v34  ;;  %v1515_v36 = vadd.f32 %v1159_v14, %v955_v35  ;;  %v1428_v38 = vpop.f32.mrb[13].mxu1 }
 0x2dd   : > { %v1008_v37 = vmax.f32 %v1515_v36, 0.0 }
 0x2de   : > { %v960_v39 = vpop.f32.mrb[14].mxu1 }
 0x2df   : > { %1021 = vst [vmem:[%s2089_s11 + $0xa0] sm:$0xff] %v1008_v37  ;;  %v1516_v40 = vadd.f32 %v1159_v14, %v960_v39  ;;  %v1431_v42 = vpop.f32.mrb[15].mxu1 }
 0x2e1   : > { %v1009_v43 = vmax.f32 %v1516_v40, 0.0 }
 0x2e2   : > { %v965_v41 = vpop.f32.mrb[16].mxu1 }
 0x2e3   : > { %1022 = vst [vmem:[%s2089_s11 + $0xb8] sm:$0xff] %v1009_v43  ;;  %v1517_v44 = vadd.f32 %v1159_v14, %v965_v41  ;;  %v1434_v46 = vpop.f32.mrb[17].mxu1 }
 0x2e5   : > { %v1010_v47 = vmax.f32 %v1517_v44, 0.0 }
 0x2e6   : > { %v970_v48 = vpop.f32.mrb[18].mxu1 }
 0x2e7   : > { %1023 = vst [vmem:[%s2089_s11 + $0xd0] sm:$0xff] %v1010_v47  ;;  %v1518_v45 = vadd.f32 %v1159_v14, %v970_v48  ;;  %v1437_v50 = vpop.f32.mrb[19].mxu1 }
 0x2e9   : > { %v1011_v51 = vmax.f32 %v1518_v45, 0.0 }
 0x2ea   : > { %v975_v52 = vpop.f32.mrb[20].mxu1 }
 0x2eb   : > { %1024 = vst [vmem:[%s2089_s11 + $0xe8] sm:$0xff] %v1011_v51  ;;  %v1519_v54 = vadd.f32 %v1159_v14, %v975_v52  ;;  %v1440_v49 = vpop.f32.mrb[21].mxu1 }
 0x2ed   : > { %v1012_v55 = vmax.f32 %v1519_v54, 0.0 }
 0x2ee   : > { %v980_v56 = vpop.f32.mrb[22].mxu1 }
 0x2ef   : > { %1025 = vst [vmem:[%s2089_s11 + $0x100] sm:$0xff] %v1012_v55  ;;  %v1520_v58 = vadd.f32 %v1159_v14, %v980_v56  ;;  %v1443_v59 = vpop.f32.mrb[23].mxu1 }
 0x2f1   : > { %v1013_v53 = vmax.f32 %v1520_v58, 0.0  ;;  %1035 = sbr.rel (!%p2325_p6) target bundleno = 789 (0x315), region = 44 }
 0x2f2   : > { %v985_v60 = vpop.f32.mrb[24].mxu1 }
 0x2f3   : > { %1026 = vst [vmem:[%s2089_s11 + $0x118] sm:$0xff] %v1013_v53  ;;  %v1521_v62 = vadd.f32 %v1159_v14, %v985_v60  ;;  %v1446_v63 = vpop.f32.mrb[25].mxu1 }
 0x2f5   : > { %v1014_v2 = vmax.f32 %v1521_v62, 0.0 }
 0x2f7   : > { %1027 = vst [vmem:[%s2089_s11 + $0x130] sm:$0xff] %v1014_v2 }
 0x2f8   : > { %s2332_s27 = smov (!%p1038_p9, %s1037_s27), 13 }
 0x2f9   : > { %s2255_s28 = smul.u32 384, %s2332_s27 }
 0x2fb   : > { %s1043_s29 = ssub.s32 4992, %s2255_s28 }
 0x2fc   : > { %1044 = vsyncadd %s2250_s22, %s1043_s29  ;;  %p1178_p10 = scmp.ne.s32.totalorder %s2255_s28, 0  ;;  %s1565_s30 = smul.u32 4992, %s1758_s19 }
 0x2fd   : > { %s1050_s6 = sshll.u32 %s2089_s11, 4  ;;  %s1709_s8 = smov [#allocation5]   ;;  %s2267_s6 = int_to_ptr.vmem [resolvable:$true] %s1050_s6 }
 0x2fe   : > { %s2265_s5 = scalar_lea.hbm %s2315_s4, %s1565_s30  ;;  %s1635_s23 = scalar_lea.vmem %s2267_s6, %s2255_s28 }
 0x2ff   : > { %p1636_p12 = scmp.ne.s32.totalorder %s2267_s6, %s1635_s23  ;;  %s1639_s9 = sshll.u32 %s1709_s8, 4  ;;  %s1640_s9 = int_to_ptr.vmem [resolvable:$false] %s1639_s9 }
 0x300   : > { %s1641_s19 = scalar_lea.vmem %s1640_s9, 9984  ;;  %p1642_p4 = scmp.lt.s32.totalorder %s2267_s6, %s1640_s9 }
 0x301   : > { %p1637_p2 = pnand %p1636_p12, %p1178_p10  ;;  %p1643_p7 = scmp.lt.s32.totalorder %s1641_s19, %s1635_s23 }
 0x303   : > { %p1638_p3 = pneg %p1637_p2  ;;  %p1644_p8 = por %p1643_p7, %p1642_p4 }
 0x305   : > { %p1645_p11 = pnand %p1644_p8, %p1638_p3 }
 0x307   : > { %1648 = shalt.err (!%p1645_p11)
}
 0x308   : > { %s1649_s10 = scalar_lea.hbm %s2265_s5, %s2255_s28  ;;  %s1653_s13 = scalar_lea.hbm %s2315_s4, 9600 }
 0x309   : > { %p1650_p13 = scmp.ne.s32.totalorder %s2265_s5, %s1649_s10  ;;  %p1654_p5 = scmp.lt.u32.totalorder %s2265_s5, %s2315_s4 }
 0x30a   : > { %p1655_p6 = scmp.lt.u32.totalorder %s1653_s13, %s1649_s10  ;;  %p1657_p12 = scmp.lt.u32.totalorder %s1649_s10, %s2265_s5 }
 0x30b   : > { %p1651_p1 = pnand %p1650_p13, %p1178_p10 }
 0x30c   : > { %p1656_p9 = por %p1655_p6, %p1654_p5 }
 0x30d   : > { %p1652_p0 = pneg %p1651_p1 }
 0x30e   : > { %p1658_p2 = por %p1657_p12, %p1656_p9 }
 0x310   : > { %p1659_p3 = pnand %p1658_p2, %p1652_p0 }
 0x312   : > { %1662 = shalt.err (!%p1659_p3)
}
 0x313   : > { %s1710_s27 = smov 384   ;;  %s1711_s29 = smov 24  }
 0x314   : > { %1056 = dma.vmem_to_hbm [thread:$0]  (%p1178_p10), %s2267_s6, %s2255_s28, %s2265_s5, %s2250_s22, %s1710_s27, %s1710_s27, %s1711_s29  }
 0x315 PF: > { %p1566_p4 = scmp.ge.s32.totalorder %s1701_s18, 2  ;;  %s1065_s30 = sand.u32 1, %s1689_s15  }
 0x316   : > { %p2326_p7 = scmp.ne.s32.totalorder %s2319_s26, 0  ;;  %s1066_s25 = scalar_lea.sflag [#allocation4], %s1065_s30 }
 0x318   : > { %p1560_p8 = pnand %p1566_p4, %p2326_p7 }
 0x31a   : > { %1684 = dma.done.wait (!%p1560_p8), %s1066_s25, 4992  }
 0x31b   : > { %1686 = vsyncadd (!%p1560_p8), %s1066_s25, 4294962304  ;;  %p15_p11 = scmp.ge.s32.totalorder %s1762_s21, 4   ;;  %s2327_s15 = smov %s1693_s16 }
 0x31c   : > { %s2328_s16 = smov %s1697_s17  ;;  %s2329_s17 = smov %s1773_s24 }
 0x31d   : > { %s2330_s18 = smov %s1762_s21  ;;  %17 = sbr.rel (!%p15_p11) target bundleno = 4 (0x4), region = 77 }
 0x324   :  { %1071 = vsyncpa [#allocation3], 1 }
 0x325   :  { %1073 = vsyncpa [#allocation3 + $0x1], 1 }
 0x326   :  { %1074 = vsyncpa [#allocation4], 1 }
 0x327   :  { %1076 = vsyncpa [#allocation4 + $0x1], 1 }

// kernel: tpu_custom_call.1
= control target key start
LH: loop header
LB: loop body
LE: loop exit
PB: predicated region body
PF: predicated region fallthrough
CT: control target
= control target key end

     0   :  { %9 = vsyncpa [#allocation3], 0  ;;  %s2311_s0 = inlined_call_operand.vmem [shape: f32[200,32], index: 0, kind: input, shape index: {}]   ;;  %s2312_s1 = inlined_call_operand.hbm [shape: f32[32,384], index: 1, kind: input, shape index: {}]   ;;  %s2313_s2 = inlined_call_operand.vmem [shape: f32[2,128,128], index: 2, kind: input, shape index: {}]   ;;  %s2314_s3 = inlined_call_operand.vmem [shape: f32[3,128], index: 3, kind: input, shape index: {}]   ;;  %s2315_s4 = inlined_call_operand.hbm [shape: f32[200,384], index: 4, kind: output, shape index: {}]  }
   0x1   :  { %10 = vsyncpa [#allocation4], 0 }
   0x2   :  { %12 = vsyncpa [#allocation4 + $0x1], 0  ;;  %s1737_s15 = smov 0   ;;  %s1739_s16 = smov 0  }
   0x3   :  { %s1741_s17 = smov 0   ;;  %s1743_s18 = smov 0  }
   0x4 LB: > { %s1758_s19 = sadd.s32 4294967295, %s1701_s18   ;;  %s1124_s20 = sadd.s32 4294967294, %s1701_s18   ;;  %s1701_s18 = sphi %s1743_s18, %s2330_s18   ;;  %s1697_s17 = sphi %s1741_s17, %s2329_s17   ;;  %s1693_s16 = sphi %s1739_s16, %s2328_s16   ;;  %s1689_s15 = sphi %s1737_s15, %s2327_s15  }
   0x5   : > { %s1762_s21 = sadd.s32 1, %s1701_s18   ;;  %s114_s22 = sadd.s32 1, %s1697_s17 }
   0x6   : > { %s111_s23 = ssub.s32 %s1701_s18, %s1762_s21  ;;  %p124_p0 = scmp.ne.s32.totalorder %s1697_s17, %s1693_s16 }
   0x7   : > { %p112_p1 = scmp.eq.s32.totalorder %s111_s23, 0  ;;  %p125_p2 = scmp.eq.s32.totalorder %s1758_s19, 1 }
   0x8   : > { %p130_p3 = scmp.ne.s32.totalorder %s1693_s16, %s1689_s15  ;;  %p131_p4 = scmp.eq.s32.totalorder %s1124_s20, 1 }
   0x9   : > { %s1773_s24 = scalar_select %p112_p1, %s1697_s17, %s114_s22  }
   0xa   : > { %p1775_p5 = por %p125_p2, %p124_p0  ;;  %p1779_p6 = por %p131_p4, %p130_p3 }
   0xb   : > { %p1125_p7 = scmp.ge.s32.totalorder %s1701_s18, 1  ;;  %p138_p8 = scmp.lt.s32.totalorder %s1701_s18, 3 }
   0xc   : > { %s2318_s25 = scalar_select %p1775_p5, 1, 0 }
   0xd   : > { %s2319_s26 = scalar_select %p1779_p6, 1, 0 }
   0xe   : > { %p2316_p9 = scmp.eq.s32.totalorder %s1758_s19, 0  ;;  %p1786_p10 = pnand %p1125_p7, %p138_p8 }
   0xf   : > { %s1703_s28 = smov [#allocation2]   ;;  %s1607_s7 = scalar_lea.hbm %s2312_s1, 1536 }
  0x10   : > { %s2320_s27 = scalar_select %p1786_p10, 1, 0 }
  0x11   : > { %s150_s29 = sshll.u32 %s1703_s28, 4  ;;  %p1555_p11 = pneg %p1786_p10  ;;  %s151_s29 = int_to_ptr.vmem [resolvable:$true] %s150_s29 }
  0x12   : > { %p1608_p13 = scmp.ne.s32.totalorder %s2312_s1, %s1607_s7  ;;  %p1614_p3 = scmp.lt.u32.totalorder %s1607_s7, %s2312_s1 }
  0x13   : > { %p1794_p12 = pnand %p2316_p9, %p1555_p11 }
  0x15   : > { %p1609_p0 = pneg %p1794_p12 }
  0x17   : > { %p1610_p1 = pnand %p1609_p0, %p1608_p13 }
  0x19   : > { %p1611_p2 = pneg %p1610_p1 }
  0x1b   : > { %p1616_p4 = pnand %p1614_p3, %p1611_p2 }
  0x1d   : > { %1619 = shalt.err (!%p1616_p4)
}
  0x1e   : > { %s1620_s12 = scalar_lea.vmem %s151_s29, 1536  ;;  %p1628_p9 = scmp.lt.s32.totalorder %s151_s29, %s151_s29 }
  0x1f   : > { %p1621_p7 = scmp.ne.s32.totalorder %s151_s29, %s1620_s12  ;;  %p1629_p6 = scmp.lt.s32.totalorder %s1620_s12, %s1620_s12 }
  0x21   : > { %p1623_p8 = pnand %p1621_p7, %p1609_p0  ;;  %p1630_p5 = por %p1629_p6, %p1628_p9 }
  0x23   : > { %p1624_p11 = pneg %p1623_p8 }
  0x25   : > { %p1631_p10 = pnand %p1630_p5, %p1624_p11 }
  0x27   : > { %1634 = shalt.err (!%p1631_p10)
}
  0x28   : > { %s1704_s13 = smov 384   ;;  %s1705_s14 = smov 24  }
  0x29   : > { %1558 = dma.hbm_to_vmem [thread:$0]  (!%p1794_p12), %s2312_s1, 1536, %s151_s29, [#allocation3], %s1704_s13, %s1704_s13, %s1705_s14  }
  0x2a   : > { %p2322_p13 = scmp.ne.s32.totalorder %s2320_s27, 0 }
  0x2b   : > { %p2323_p1 = scmp.eq.s32.totalorder (!%p2322_p13), %s1758_s19, 0 }
  0x2c   : > { %189 = sbr.rel (%p2322_p13) target bundleno = 789 (0x315), region = 36 }
  0x33   : > { %1680 = dma.done.wait (%p2323_p1), [#allocation3], 1536   ;;  %p2324_p0 = pmov %p2323_p1 }
  0x34   : > { %s1821_s23 = smul.u32 13, %s1758_s19  ;;  %v1706_v0 = vmov 0.0   ;;  %v1707_v1 = vmov 0.0|0.0   ;;  %v253_v2 = vld [vmem:[#allocation2 + $0x8] sm:$0xff]  ;;  %v256_v3 = vld [vmem:[#allocation2 + $0x20] sm:$0xff]  ;;  %v255_v6 = vld [vmem:[#allocation2 + $0x18] sm:$0xff] }
  0x35   : > { %1682 = vsyncadd (%p2324_p0), [#allocation3], 4294965760  ;;  %368 = vmatprep.mubr.f32.mxu0 %v1706_v0  ;;  %1455 = vmatprep.subr.bf16.mxu1 %v1707_v1  ;;  %v252_v4 = vld [vmem:[#allocation2] sm:$0xff]  ;;  %v1447_v5 = vpack.c.bf16 %v256_v3, %v253_v2  ;;  %v259_v7 = vld [vmem:[#allocation2 + $0x38] sm:$0xff]  ;;  %vm264_vm0 = vcmask 261120   ;;  %vm1708_vm1 = vmmov 0  }
  0x36   : > { %p224_p5 = scmp.lt.s32.totalorder %s1821_s23, 24  ;;  %v262_v8 = vld [vmem:[#allocation2 + $0x50] sm:$0xff]  ;;  %v1449_v9 = vpack.c.bf16 %v255_v6, %v252_v4  ;;  %v261_v12 = vld [vmem:[#allocation2 + $0x48] sm:$0xff]  ;;  %v639_v14 = vld [vmem:[%s2313_s2] sm:$0xff]  ;;  %1266 = vmatprep.mubr.msk.f32.mxu1 %vm1708_vm1, %v1706_v0  ;;  %p2325_p6 = scmp.ne.s32.totalorder %s2318_s25, 0 }
  0x37   : > { %v1451_v10 = vpack.c.bf16 %v262_v8, %v259_v7  ;;  %v258_v11 = vld [vmem:[#allocation2 + $0x30] sm:$0xff]  ;;  %1448 = vmatprep.subr.bf16.mxu0 %v1447_v5  ;;  %v640_v15 = vld [vmem:[%s2313_s2 + $0x8] sm:$0xff]  ;;  %v641_v18 = vld [vmem:[%s2313_s2 + $0x10] sm:$0xff] }
  0x38   : > { %s225_s27 = scalar_select %p224_p5, %s1821_s23, 24  ;;  %1450 = vmatpush1.bf16.msra.mxu0 %v1449_v9  ;;  %v1453_v13 = vpack.c.bf16 %v261_v12, %v258_v11  ;;  %v1462_v17 = vpack.c.bf16 %v640_v15, %v639_v14  ;;  %v642_v19 = vld [vmem:[%s2313_s2 + $0x18] sm:$0xff]  ;;  %v643_v22 = vld [vmem:[%s2313_s2 + $0x20] sm:$0xff]  ;;  %v644_v23 = vld [vmem:[%s2313_s2 + $0x28] sm:$0xff] }
  0x39   : > { %1452 = vmatprep.subr.bf16.mxu0 %v1451_v10  ;;  %v1465_v21 = vpack.c.bf16 %v642_v19, %v641_v18  ;;  %v1468_v25 = vpack.c.bf16 %v644_v23, %v643_v22  ;;  %v645_v26 = vld [vmem:[%s2313_s2 + $0x30] sm:$0xff]  ;;  %v646_v27 = vld [vmem:[%s2313_s2 + $0x38] sm:$0xff]  ;;  %v647_v30 = vld [vmem:[%s2313_s2 + $0x40] sm:$0xff] }
  0x3a   : > { %s1130_s28 = sshll.u32 %s225_s27, 3  ;;  %v1471_v29 = vpack.c.bf16 %v646_v27, %v645_v26  ;;  %v648_v31 = vld [vmem:[%s2313_s2 + $0x48] sm:$0xff]  ;;  %v649_v34 = vld [vmem:[%s2313_s2 + $0x50] sm:$0xff]  ;;  %v650_v35 = vld [vmem:[%s2313_s2 + $0x58] sm:$0xff]  ;;  %s1037_s27 = ssub.s32 (%p2325_p6), 25, %s1821_s23 }
  0x3b   : > { %s1830_s5 = scalar_lea.vmem %s2311_s0, %s1130_s28  ;;  %v1474_v33 = vpack.c.bf16 %v648_v31, %v647_v30  ;;  %v1477_v37 = vpack.c.bf16 %v650_v35, %v649_v34  ;;  %v651_v38 = vld [vmem:[%s2313_s2 + $0x60] sm:$0xff]  ;;  %v652_v39 = vld [vmem:[%s2313_s2 + $0x68] sm:$0xff]  ;;  %v653_v42 = vld [vmem:[%s2313_s2 + $0x70] sm:$0xff]  ;;  %p1038_p9 = scmp.lt.s32.totalorder (%p2325_p6), %s1037_s27, 13 }
  0x3c   : > { %1454 = vmatpush1.bf16.msra.mxu0 %v1453_v13  ;;  %v1839_v16 = vld [vmem:[%s1830_s5] sm:$0xff]  ;;  %v1852_v20 = vld [vmem:[%s1830_s5 + $0x8] sm:$0xff]  ;;  %v1865_v24 = vld [vmem:[%s1830_s5 + $0x10] sm:$0xff]  ;;  %v1480_v41 = vpack.c.bf16 %v652_v39, %v651_v38 }
  0x3d   : > { %1461 = vmatprep.subr.bf16.mxu0 %v1707_v1  ;;  %v1878_v28 = vld [vmem:[%s1830_s5 + $0x18] sm:$0xff]  ;;  %v1891_v32 = vld [vmem:[%s1830_s5 + $0x20] sm:$0xff]  ;;  %v1904_v36 = vld [vmem:[%s1830_s5 + $0x28] sm:$0xff] }
  0x3e   : > { %v1917_v40 = vld [vmem:[%s1830_s5 + $0x30] sm:$0xff]  ;;  %v654_v43 = vld [vmem:[%s2313_s2 + $0x78] sm:$0xff]  ;;  %v1937_v46 = vld [vmem:[%s1830_s5 + $0x40] sm:$0xff] }
  0x3f   : > { %1131 = vmatmul.mubr.msk.f32.vlgmr.msra.gmra.mrb[0].mxu0 %vm264_vm0, %v1839_v16  ;;  %v1930_v44 = vld [vmem:[%s1830_s5 + $0x38] sm:$0xff]  ;;  %v1483_v45 = vpack.c.bf16 %v654_v43, %v653_v42  ;;  %v1943_v47 = vld [vmem:[%s1830_s5 + $0x48] sm:$0xff]  ;;  %v1949_v48 = vld [vmem:[%s1830_s5 + $0x50] sm:$0xff] }
  0x40   : > { %374 = vmatprep.mubr.f32.mxu0 %v1706_v0  ;;  %1463 = vmatpush3.bf16.msra.mxu0 %v1462_v17  ;;  %v1955_v49 = vld [vmem:[%s1830_s5 + $0x58] sm:$0xff]  ;;  %v1961_v50 = vld [vmem:[%s1830_s5 + $0x60] sm:$0xff]  ;;  %v257_v52 = vld [vmem:[#allocation2 + $0x28] sm:$0xff]  ;;  %s216_s5 = sand.u32 1, %s1693_s16  }
  0x41   : > { %1464 = vmatprep.subr.bf16.mxu0 %v1707_v1  ;;  %v254_v51 = vld [vmem:[#allocation2 + $0x10] sm:$0xff]  ;;  %v260_v53 = vld [vmem:[#allocation2 + $0x40] sm:$0xff]  ;;  %v263_v55 = vld [vmem:[#allocation2 + $0x58] sm:$0xff]  ;;  %s1548_s8 = smul.u32 312, %s216_s5  ;;  %s2250_s22 = scalar_lea.sflag [#allocation4], %s216_s5 }
  0x42   : > { %v1456_v54 = vpack.c.bf16 %v257_v52, %v254_v51  ;;  %v1459_v56 = vpack.c.bf16 %v263_v55, %v260_v53  ;;  %v1160_v57 = vld [vmem:[%s2313_s2 + $0x80] sm:$0xff]  ;;  %v1161_v58 = vld [vmem:[%s2313_s2 + $0x88] sm:$0xff]  ;;  %v1162_v60 = vld [vmem:[%s2313_s2 + $0x90] sm:$0xff] }
  0x43   : > { %1132 = vmatmul.mubr.msk.f32.gmra.mrb[2].mxu0 %vm264_vm0, %v1852_v20  ;;  %v1486_v59 = vpack.c.bf16 %v1161_v58, %v1160_v57  ;;  %v1163_v61 = vld [vmem:[%s2313_s2 + $0x98] sm:$0xff]  ;;  %v1164_v63 = vld [vmem:[%s2313_s2 + $0xa0] sm:$0xff]  ;;  %v1165_v2 = vld [vmem:[%s2313_s2 + $0xa8] sm:$0xff]  ;;  %s2089_s11 = scalar_lea.vmem [#allocation5], %s1548_s8 }
  0x44   : > { %380 = vmatprep.mubr.f32.mxu0 %v1706_v0  ;;  %1466 = vmatpush3.bf16.msra.mxu0 %v1465_v21  ;;  %v1489_v62 = vpack.c.bf16 %v1163_v61, %v1162_v60  ;;  %v1492_v3 = vpack.c.bf16 %v1165_v2, %v1164_v63  ;;  %v1166_v4 = vld [vmem:[%s2313_s2 + $0xb0] sm:$0xff]  ;;  %v1167_v5 = vld [vmem:[%s2313_s2 + $0xb8] sm:$0xff]  ;;  %v1168_v7 = vld [vmem:[%s2313_s2 + $0xc0] sm:$0xff] }
  0x45   : > { %1467 = vmatprep.subr.bf16.mxu0 %v1707_v1  ;;  %1457 = vmatpush3.bf16.msra.mxu1 %v1456_v54  ;;  %v1495_v6 = vpack.c.bf16 %v1167_v5, %v1166_v4  ;;  %v1169_v8 = vld [vmem:[%s2313_s2 + $0xc8] sm:$0xff]  ;;  %v1170_v10 = vld [vmem:[%s2313_s2 + $0xd0] sm:$0xff]  ;;  %v1171_v11 = vld [vmem:[%s2313_s2 + $0xd8] sm:$0xff] }
  0x46   : > { %1458 = vmatprep.subr.bf16.mxu1 %v1707_v1  ;;  %v1498_v9 = vpack.c.bf16 %v1169_v8, %v1168_v7  ;;  %v1501_v12 = vpack.c.bf16 %v1171_v11, %v1170_v10  ;;  %v1172_v13 = vld [vmem:[%s2313_s2 + $0xe0] sm:$0xff]  ;;  %v1173_v14 = vld [vmem:[%s2313_s2 + $0xe8] sm:$0xff]  ;;  %v1175_v17 = vld [vmem:[%s2313_s2 + $0xf8] sm:$0xff] }
  0x47   : > { %1133 = vmatmul.mubr.msk.f32.gmra.mrb[4].mxu0 %vm264_vm0, %v1865_v24  ;;  %v1504_v15 = vpack.c.bf16 %v1173_v14, %v1172_v13 }
  0x48   : > { %386 = vmatprep.mubr.f32.mxu0 %v1706_v0  ;;  %1469 = vmatpush3.bf16.msra.mxu0 %v1468_v25 }
  0x49   : > { %1470 = vmatprep.subr.bf16.mxu0 %v1707_v1  ;;  %1460 = vmatpush3.bf16.msra.mxu1 %v1459_v56 }
  0x4a   : > { %1485 = vmatprep.subr.bf16.mxu1 %v1707_v1 }
  0x4b   : > { %1134 = vmatmul.mubr.msk.f32.gmra.mrb[6].mxu0 %vm264_vm0, %v1878_v28 }
  0x4c   : > { %392 = vmatprep.mubr.f32.mxu0 %v1706_v0  ;;  %1472 = vmatpush3.bf16.msra.mxu0 %v1471_v29 }
  0x4d   : > { %1473 = vmatprep.subr.bf16.mxu0 %v1707_v1  ;;  %1267 = vmatmul.mubr.msk.f32.vlgmr.msra.gmra.mrb[0].mxu1 %vm264_vm0, %v1839_v16  ;;  %v1174_v16 = vld [vmem:[%s2313_s2 + $0xf0] sm:$0xff] }
  0x4e   : > { %1487 = vmatpush3.bf16.msra.mxu1 %v1486_v59  ;;  %1269 = vmatprep.mubr.msk.f32.mxu1 %vm1708_vm1, %v1706_v0  ;;  %v1507_v18 = vpack.c.bf16 %v1175_v17, %v1174_v16 }
  0x4f   : > { %1135 = vmatmul.mubr.msk.f32.gmra.mrb[8].mxu0 %vm264_vm0, %v1891_v32  ;;  %1488 = vmatprep.subr.bf16.mxu1 %v1707_v1 }
  0x50   : > { %398 = vmatprep.mubr.f32.mxu0 %v1706_v0  ;;  %1475 = vmatpush3.bf16.msra.mxu0 %v1474_v33 }
  0x51   : > { %1476 = vmatprep.subr.bf16.mxu0 %v1707_v1  ;;  %1270 = vmatmul.mubr.msk.f32.gmra.mrb[2].mxu1 %vm264_vm0, %v1852_v20 }
  0x52   : > { %1272 = vmatprep.mubr.msk.f32.mxu1 %vm1708_vm1, %v1706_v0  ;;  %1490 = vmatpush3.bf16.msra.mxu1 %v1489_v62 }
  0x53   : > { %1136 = vmatmul.mubr.msk.f32.gmra.mrb[10].mxu0 %vm264_vm0, %v1904_v36  ;;  %1491 = vmatprep.subr.bf16.mxu1 %v1707_v1 }
  0x54   : > { %404 = vmatprep.mubr.f32.mxu0 %v1706_v0  ;;  %1478 = vmatpush3.bf16.msra.mxu0 %v1477_v37 }
  0x55   : > { %1479 = vmatprep.subr.bf16.mxu0 %v1707_v1  ;;  %1273 = vmatmul.mubr.msk.f32.gmra.mrb[4].mxu1 %vm264_vm0, %v1865_v24 }
  0x56   : > { %1275 = vmatprep.mubr.msk.f32.mxu1 %vm1708_vm1, %v1706_v0  ;;  %1493 = vmatpush3.bf16.msra.mxu1 %v1492_v3 }
  0x57   : > { %1137 = vmatmul.mubr.msk.f32.gmra.mrb[12].mxu0 %vm264_vm0, %v1917_v40  ;;  %1494 = vmatprep.subr.bf16.mxu1 %v1707_v1 }
  0x58   : > { %410 = vmatprep.mubr.f32.mxu0 %v1706_v0  ;;  %1481 = vmatpush3.bf16.msra.mxu0 %v1480_v41 }
  0x59   : > { %1482 = vmatprep.subr.bf16.mxu0 %v1707_v1  ;;  %1276 = vmatmul.mubr.msk.f32.gmra.mrb[6].mxu1 %vm264_vm0, %v1878_v28 }
  0x5a   : > { %1278 = vmatprep.mubr.msk.f32.mxu1 %vm1708_vm1, %v1706_v0  ;;  %1496 = vmatpush3.bf16.msra.mxu1 %v1495_v6 }
  0x5b   : > { %1138 = vmatmul.mubr.msk.f32.gmra.mrb[14].mxu0 %vm264_vm0, %v1930_v44  ;;  %1497 = vmatprep.subr.bf16.mxu1 %v1707_v1 }
  0x5c   : > { %416 = vmatprep.mubr.f32.mxu0 %v1706_v0  ;;  %1484 = vmatpush3.bf16.msra.mxu0 %v1483_v45 }
  0x5d   : > { %1279 = vmatmul.mubr.msk.f32.gmra.mrb[8].mxu1 %vm264_vm0, %v1891_v32 }
  0x5e   : > { %1281 = vmatprep.mubr.msk.f32.mxu1 %vm1708_vm1, %v1706_v0  ;;  %1499 = vmatpush3.bf16.msra.mxu1 %v1498_v9  ;;  %v2167_v9 = vld [vmem:[%s2314_s3 + $0x1] ss:$0 sm:$0xff] }
  0x5f   : > { %1139 = vmatmul.mubr.msk.f32.gmra.mrb[16].mxu0 %vm264_vm0, %v1937_v46  ;;  %1500 = vmatprep.subr.bf16.mxu1 %v1707_v1 }
  0x60   : > { %422 = vmatprep.mubr.f32.mxu0 %v1706_v0 }
  0x61   : > { %1282 = vmatmul.mubr.msk.f32.gmra.mrb[10].mxu1 %vm264_vm0, %v1904_v36 }
  0x62   : > { %1284 = vmatprep.mubr.msk.f32.mxu1 %vm1708_vm1, %v1706_v0  ;;  %1502 = vmatpush3.bf16.msra.mxu1 %v1501_v12 }
  0x63   : > { %1140 = vmatmul.mubr.msk.f32.gmra.mrb[18].mxu0 %vm264_vm0, %v1943_v47  ;;  %1503 = vmatprep.subr.bf16.mxu1 %v1707_v1 }
  0x64   : > { %428 = vmatprep.mubr.f32.mxu0 %v1706_v0 }
  0x65   : > { %1285 = vmatmul.mubr.msk.f32.gmra.mrb[12].mxu1 %vm264_vm0, %v1917_v40 }
  0x66   : > { %1287 = vmatprep.mubr.msk.f32.mxu1 %vm1708_vm1, %v1706_v0  ;;  %1505 = vmatpush3.bf16.msra.mxu1 %v1504_v15 }
  0x67   : > { %1141 = vmatmul.mubr.msk.f32.gmra.mrb[20].mxu0 %vm264_vm0, %v1949_v48  ;;  %1506 = vmatprep.subr.bf16.mxu1 %v1707_v1  ;;  %v2084_v1 = vld [vmem:[%s2314_s3] ss:$0 sm:$0xff] }
  0x68   : > { %434 = vmatprep.mubr.f32.mxu0 %v1706_v0 }
  0x69   : > { %1288 = vmatmul.mubr.msk.f32.gmra.mrb[14].mxu1 %vm264_vm0, %v1930_v44 }
  0x6a   : > { %1290 = vmatprep.mubr.msk.f32.mxu1 %vm1708_vm1, %v1706_v0  ;;  %1508 = vmatpush3.bf16.msra.mxu1 %v1507_v18 }
  0x6b   : > { %1142 = vmatmul.mubr.msk.f32.gmra.mrb[22].mxu0 %vm264_vm0, %v1955_v49 }
  0x6c   : > { %440 = vmatprep.mubr.f32.mxu0 %v1706_v0 }
  0x6d   : > { %1291 = vmatmul.mubr.msk.f32.gmra.mrb[16].mxu1 %vm264_vm0, %v1937_v46 }
  0x6e   : > { %1293 = vmatprep.mubr.msk.f32.mxu1 %vm1708_vm1, %v1706_v0 }
  0x6f   : > { %1143 = vmatmul.mubr.msk.f32.gmra.mrb[24].mxu0 %vm264_vm0, %v1961_v50 }
  0x70   : > { %1337 = vmatprep.mubr.msk.f32.mxu0 %vm1708_vm1, %v1706_v0 }
  0x71   : > { %1294 = vmatmul.mubr.msk.f32.gmra.mrb[18].mxu1 %vm264_vm0, %v1943_v47 }
  0x72   : > { %1296 = vmatprep.mubr.msk.f32.mxu1 %vm1708_vm1, %v1706_v0 }
  0x75   : > { %1297 = vmatmul.mubr.msk.f32.gmra.mrb[20].mxu1 %vm264_vm0, %v1949_v48 }
  0x76   : > { %1299 = vmatprep.mubr.msk.f32.mxu1 %vm1708_vm1, %v1706_v0 }
  0x79   : > { %1300 = vmatmul.mubr.msk.f32.gmra.mrb[22].mxu1 %vm264_vm0, %v1955_v49 }
  0x7a   : > { %1302 = vmatprep.mubr.msk.f32.mxu1 %vm1708_vm1, %v1706_v0 }
  0x7d   : > { %1303 = vmatmul.mubr.msk.f32.gmra.mrb[24].mxu1 %vm264_vm0, %v1961_v50 }
  0x7e   : > { %1408 = vmatprep.mubr.msk.f32.mxu1 %vm1708_vm1, %v1706_v0 }
 0x112   : > { %v370_v19 = vpop.f32.mrb[0].mxu0 }
 0x113   : > { %v582_v20 = vadd.f32 %v2084_v1, %v370_v19  ;;  %v2087_v21 = vpop.f32.mrb[1].mxu0 }
 0x114   : > { %v626_v10 = vadd.f32 %v2167_v9, %v2087_v21 }
 0x115   : > { %v595_v22 = vmax.f32 %v582_v20, 0.0 }
 0x116   : > { %v376_v23 = vpop.f32.mrb[2].mxu0 }
 0x117   : > { %608 = vst [vmem:[%s2089_s11] sm:$0xff] %v595_v22  ;;  %v583_v24 = vadd.f32 %v2084_v1, %v376_v23  ;;  %v2093_v25 = vpop.f32.mrb[3].mxu0  ;;  %1338 = vmatmul.mubr.f32.vlgmr.msra.gmra.mrb[26].mxu0 %v595_v22 }
 0x118   : > { %1340 = vmatprep.mubr.msk.f32.mxu0 %vm1708_vm1, %v1706_v0  ;;  %v627_v14 = vadd.f32 %v2167_v9, %v2093_v25 }
 0x119   : > { %v596_v26 = vmax.f32 %v583_v24, 0.0 }
 0x11a   : > { %v382_v27 = vpop.f32.mrb[4].mxu0 }
 0x11b   : > { %609 = vst [vmem:[%s2089_s11 + $0x18] sm:$0xff] %v596_v26  ;;  %v584_v28 = vadd.f32 %v2084_v1, %v382_v27  ;;  %v2099_v29 = vpop.f32.mrb[5].mxu0  ;;  %1341 = vmatmul.mubr.f32.gmra.mrb[28].mxu0 %v596_v26 }
 0x11c   : > { %1343 = vmatprep.mubr.msk.f32.mxu0 %vm1708_vm1, %v1706_v0 }
 0x11d   : > { %v597_v30 = vmax.f32 %v584_v28, 0.0 }
 0x11e   : > { %v388_v31 = vpop.f32.mrb[6].mxu0 }
 0x11f   : > { %610 = vst [vmem:[%s2089_s11 + $0x30] sm:$0xff] %v597_v30  ;;  %v585_v32 = vadd.f32 %v2084_v1, %v388_v31  ;;  %v2105_v33 = vpop.f32.mrb[7].mxu0  ;;  %1344 = vmatmul.mubr.f32.gmra.mrb[30].mxu0 %v597_v30 }
 0x120   : > { %1346 = vmatprep.mubr.msk.f32.mxu0 %vm1708_vm1, %v1706_v0  ;;  %v629_v23 = vadd.f32 %v2167_v9, %v2105_v33 }
 0x121   : > { %v598_v34 = vmax.f32 %v585_v32, 0.0 }
 0x122   : > { %v394_v35 = vpop.f32.mrb[8].mxu0 }
 0x123   : > { %611 = vst [vmem:[%s2089_s11 + $0x48] sm:$0xff] %v598_v34  ;;  %v586_v36 = vadd.f32 %v2084_v1, %v394_v35  ;;  %v2111_v37 = vpop.f32.mrb[9].mxu0  ;;  %1347 = vmatmul.mubr.f32.gmra.mrb[32].mxu0 %v598_v34 }
 0x124   : > { %1349 = vmatprep.mubr.msk.f32.mxu0 %vm1708_vm1, %v1706_v0  ;;  %v630_v28 = vadd.f32 %v2167_v9, %v2111_v37 }
 0x125   : > { %v599_v38 = vmax.f32 %v586_v36, 0.0 }
 0x126   : > { %v400_v39 = vpop.f32.mrb[10].mxu0 }
 0x127   : > { %612 = vst [vmem:[%s2089_s11 + $0x60] sm:$0xff] %v599_v38  ;;  %v587_v40 = vadd.f32 %v2084_v1, %v400_v39  ;;  %v2117_v41 = vpop.f32.mrb[11].mxu0  ;;  %1350 = vmatmul.mubr.f32.gmra.mrb[34].mxu0 %v599_v38 }
 0x128   : > { %1352 = vmatprep.mubr.msk.f32.mxu0 %vm1708_vm1, %v1706_v0  ;;  %v631_v33 = vadd.f32 %v2167_v9, %v2117_v41 }
 0x129   : > { %v600_v42 = vmax.f32 %v587_v40, 0.0 }
 0x12a   : > { %v406_v43 = vpop.f32.mrb[12].mxu0 }
 0x12b   : > { %613 = vst [vmem:[%s2089_s11 + $0x78] sm:$0xff] %v600_v42  ;;  %v588_v44 = vadd.f32 %v2084_v1, %v406_v43  ;;  %v2123_v45 = vpop.f32.mrb[13].mxu0  ;;  %1353 = vmatmul.mubr.f32.gmra.mrb[36].mxu0 %v600_v42 }
 0x12c   : > { %1355 = vmatprep.mubr.msk.f32.mxu0 %vm1708_vm1, %v1706_v0  ;;  %v632_v37 = vadd.f32 %v2167_v9, %v2123_v45 }
 0x12d   : > { %v601_v46 = vmax.f32 %v588_v44, 0.0 }
 0x12e   : > { %v412_v47 = vpop.f32.mrb[14].mxu0 }
 0x12f   : > { %614 = vst [vmem:[%s2089_s11 + $0x90] sm:$0xff] %v601_v46  ;;  %v589_v48 = vadd.f32 %v2084_v1, %v412_v47  ;;  %v2129_v49 = vpop.f32.mrb[15].mxu0  ;;  %1356 = vmatmul.mubr.f32.gmra.mrb[38].mxu0 %v601_v46 }
 0x130   : > { %1358 = vmatprep.mubr.msk.f32.mxu0 %vm1708_vm1, %v1706_v0  ;;  %v633_v41 = vadd.f32 %v2167_v9, %v2129_v49 }
 0x131   : > { %v602_v50 = vmax.f32 %v589_v48, 0.0 }
 0x132   : > { %v418_v51 = vpop.f32.mrb[16].mxu0 }
 0x133   : > { %615 = vst [vmem:[%s2089_s11 + $0xa8] sm:$0xff] %v602_v50  ;;  %v590_v52 = vadd.f32 %v2084_v1, %v418_v51  ;;  %v2135_v53 = vpop.f32.mrb[17].mxu0  ;;  %1359 = vmatmul.mubr.f32.gmra.mrb[40].mxu0 %v602_v50 }
 0x134   : > { %1361 = vmatprep.mubr.msk.f32.mxu0 %vm1708_vm1, %v1706_v0  ;;  %v634_v45 = vadd.f32 %v2167_v9, %v2135_v53 }
 0x135   : > { %v603_v54 = vmax.f32 %v590_v52, 0.0 }
 0x136   : > { %v424_v55 = vpop.f32.mrb[18].mxu0 }
 0x137   : > { %616 = vst [vmem:[%s2089_s11 + $0xc0] sm:$0xff] %v603_v54  ;;  %v591_v56 = vadd.f32 %v2084_v1, %v424_v55  ;;  %v2141_v57 = vpop.f32.mrb[19].mxu0  ;;  %1362 = vmatmul.mubr.f32.gmra.mrb[42].mxu0 %v603_v54 }
 0x138   : > { %1364 = vmatprep.mubr.msk.f32.mxu0 %vm1708_vm1, %v1706_v0  ;;  %v635_v49 = vadd.f32 %v2167_v9, %v2141_v57 }
 0x139   : > { %v604_v58 = vmax.f32 %v591_v56, 0.0 }
 0x13a   : > { %v430_v59 = vpop.f32.mrb[20].mxu0 }
 0x13b   : > { %617 = vst [vmem:[%s2089_s11 + $0xd8] sm:$0xff] %v604_v58  ;;  %v592_v60 = vadd.f32 %v2084_v1, %v430_v59  ;;  %v2147_v61 = vpop.f32.mrb[21].mxu0  ;;  %1365 = vmatmul.mubr.f32.gmra.mrb[44].mxu0 %v604_v58 }
 0x13c   : > { %1367 = vmatprep.mubr.msk.f32.mxu0 %vm1708_vm1, %v1706_v0  ;;  %v636_v53 = vadd.f32 %v2167_v9, %v2147_v61 }
 0x13d   : > { %v605_v62 = vmax.f32 %v592_v60, 0.0 }
 0x13e   : > { %v436_v63 = vpop.f32.mrb[22].mxu0 }
 0x13f   : > { %618 = vst [vmem:[%s2089_s11 + $0xf0] sm:$0xff] %v605_v62  ;;  %v593_v2 = vadd.f32 %v2084_v1, %v436_v63  ;;  %v2153_v3 = vpop.f32.mrb[23].mxu0  ;;  %1368 = vmatmul.mubr.f32.gmra.mrb[46].mxu0 %v605_v62 }
 0x140   : > { %1370 = vmatprep.mubr.msk.f32.mxu0 %vm1708_vm1, %v1706_v0  ;;  %v637_v57 = vadd.f32 %v2167_v9, %v2153_v3 }
 0x141   : > { %v606_v4 = vmax.f32 %v593_v2, 0.0 }
 0x142   : > { %v442_v5 = vpop.f32.mrb[24].mxu0 }
 0x143   : > { %619 = vst [vmem:[%s2089_s11 + $0x108] sm:$0xff] %v606_v4  ;;  %v594_v6 = vadd.f32 %v2084_v1, %v442_v5  ;;  %v2159_v7 = vpop.f32.mrb[25].mxu0  ;;  %1371 = vmatmul.mubr.f32.gmra.mrb[48].mxu0 %v606_v4  ;;  %v628_v1 = vadd.f32 %v2167_v9, %v2099_v29 }
 0x144   : > { %1373 = vmatprep.mubr.msk.f32.mxu0 %vm1708_vm1, %v1706_v0  ;;  %v638_v61 = vadd.f32 %v2167_v9, %v2159_v7 }
 0x145   : > { %v607_v8 = vmax.f32 %v594_v6, 0.0 }
 0x147   : > { %620 = vst [vmem:[%s2089_s11 + $0x120] sm:$0xff] %v607_v8  ;;  %1374 = vmatmul.mubr.f32.gmra.mrb[50].mxu0 %v607_v8 }
 0x1ea   : > { %v721_v11 = vpop.f32.mrb[26].mxu0 }
 0x1eb   : > { %v785_v12 = vadd.f32 %v721_v11, %v626_v10  ;;  %v1339_v13 = vpop.f32.mrb[27].mxu0 }
 0x1ed   : > { %v798_v15 = vmax.f32 %v785_v12, 0.0 }
 0x1ee   : > { %v726_v16 = vpop.f32.mrb[28].mxu0 }
 0x1ef   : > { %811 = vst [vmem:[%s2089_s11 + $0x8] sm:$0xff] %v798_v15  ;;  %v786_v17 = vadd.f32 %v726_v16, %v627_v14  ;;  %v1342_v18 = vpop.f32.mrb[29].mxu0  ;;  %1409 = vmatmul.mubr.f32.vlgmr.msra.gmra.mrb[0].mxu1 %v798_v15  ;;  %v1159_v14 = vld [vmem:[%s2314_s3 + $0x2] ss:$0 sm:$0xff] }
 0x1f0   : > { %1411 = vmatprep.mubr.msk.f32.mxu1 %vm1708_vm1, %v1706_v0 }
 0x1f1   : > { %v799_v19 = vmax.f32 %v786_v17, 0.0 }
 0x1f2   : > { %v731_v20 = vpop.f32.mrb[30].mxu0 }
 0x1f3   : > { %812 = vst [vmem:[%s2089_s11 + $0x20] sm:$0xff] %v799_v19  ;;  %v787_v21 = vadd.f32 %v731_v20, %v628_v1  ;;  %v1345_v22 = vpop.f32.mrb[31].mxu0  ;;  %1412 = vmatmul.mubr.f32.gmra.mrb[2].mxu1 %v799_v19 }
 0x1f4   : > { %1414 = vmatprep.mubr.msk.f32.mxu1 %vm1708_vm1, %v1706_v0 }
 0x1f5   : > { %v800_v24 = vmax.f32 %v787_v21, 0.0 }
 0x1f6   : > { %v736_v25 = vpop.f32.mrb[32].mxu0 }
 0x1f7   : > { %813 = vst [vmem:[%s2089_s11 + $0x38] sm:$0xff] %v800_v24  ;;  %v788_v26 = vadd.f32 %v736_v25, %v629_v23  ;;  %v1348_v27 = vpop.f32.mrb[33].mxu0  ;;  %1415 = vmatmul.mubr.f32.gmra.mrb[4].mxu1 %v800_v24 }
 0x1f8   : > { %1417 = vmatprep.mubr.msk.f32.mxu1 %vm1708_vm1, %v1706_v0 }
 0x1f9   : > { %v801_v29 = vmax.f32 %v788_v26, 0.0 }
 0x1fa   : > { %v741_v30 = vpop.f32.mrb[34].mxu0 }
 0x1fb   : > { %814 = vst [vmem:[%s2089_s11 + $0x50] sm:$0xff] %v801_v29  ;;  %v789_v31 = vadd.f32 %v741_v30, %v630_v28  ;;  %v1351_v32 = vpop.f32.mrb[35].mxu0  ;;  %1418 = vmatmul.mubr.f32.gmra.mrb[6].mxu1 %v801_v29 }
 0x1fc   : > { %1420 = vmatprep.mubr.msk.f32.mxu1 %vm1708_vm1, %v1706_v0 }
 0x1fd   : > { %v802_v34 = vmax.f32 %v789_v31, 0.0 }
 0x1fe   : > { %v746_v35 = vpop.f32.mrb[36].mxu0 }
 0x1ff   : > { %815 = vst [vmem:[%s2089_s11 + $0x68] sm:$0xff] %v802_v34  ;;  %v790_v36 = vadd.f32 %v746_v35, %v631_v33  ;;  %v1354_v38 = vpop.f32.mrb[37].mxu0  ;;  %1421 = vmatmul.mubr.f32.gmra.mrb[8].mxu1 %v802_v34 }
 0x200   : > { %1423 = vmatprep.mubr.msk.f32.mxu1 %vm1708_vm1, %v1706_v0 }
 0x201   : > { %v803_v39 = vmax.f32 %v790_v36, 0.0 }
 0x202   : > { %v751_v40 = vpop.f32.mrb[38].mxu0 }
 0x203   : > { %816 = vst [vmem:[%s2089_s11 + $0x80] sm:$0xff] %v803_v39  ;;  %v791_v42 = vadd.f32 %v751_v40, %v632_v37  ;;  %v1357_v43 = vpop.f32.mrb[39].mxu0  ;;  %1424 = vmatmul.mubr.f32.gmra.mrb[10].mxu1 %v803_v39 }
 0x204   : > { %1426 = vmatprep.mubr.msk.f32.mxu1 %vm1708_vm1, %v1706_v0 }
 0x205   : > { %v804_v44 = vmax.f32 %v791_v42, 0.0 }
 0x206   : > { %v756_v46 = vpop.f32.mrb[40].mxu0 }
 0x207   : > { %817 = vst [vmem:[%s2089_s11 + $0x98] sm:$0xff] %v804_v44  ;;  %v792_v47 = vadd.f32 %v756_v46, %v633_v41  ;;  %v1360_v48 = vpop.f32.mrb[41].mxu0  ;;  %1427 = vmatmul.mubr.f32.gmra.mrb[12].mxu1 %v804_v44 }
 0x208   : > { %1429 = vmatprep.mubr.msk.f32.mxu1 %vm1708_vm1, %v1706_v0 }
 0x209   : > { %v805_v50 = vmax.f32 %v792_v47, 0.0 }
 0x20a   : > { %v761_v51 = vpop.f32.mrb[42].mxu0 }
 0x20b   : > { %818 = vst [vmem:[%s2089_s11 + $0xb0] sm:$0xff] %v805_v50  ;;  %v793_v52 = vadd.f32 %v761_v51, %v634_v45  ;;  %v1363_v54 = vpop.f32.mrb[43].mxu0  ;;  %1430 = vmatmul.mubr.f32.gmra.mrb[14].mxu1 %v805_v50 }
 0x20c   : > { %1432 = vmatprep.mubr.msk.f32.mxu1 %vm1708_vm1, %v1706_v0 }
 0x20d   : > { %v806_v55 = vmax.f32 %v793_v52, 0.0 }
 0x20e   : > { %v766_v56 = vpop.f32.mrb[44].mxu0 }
 0x20f   : > { %819 = vst [vmem:[%s2089_s11 + $0xc8] sm:$0xff] %v806_v55  ;;  %v794_v58 = vadd.f32 %v766_v56, %v635_v49  ;;  %v1366_v59 = vpop.f32.mrb[45].mxu0  ;;  %1433 = vmatmul.mubr.f32.gmra.mrb[16].mxu1 %v806_v55 }
 0x210   : > { %1435 = vmatprep.mubr.msk.f32.mxu1 %vm1708_vm1, %v1706_v0 }
 0x211   : > { %v807_v60 = vmax.f32 %v794_v58, 0.0 }
 0x212   : > { %v771_v62 = vpop.f32.mrb[46].mxu0 }
 0x213   : > { %820 = vst [vmem:[%s2089_s11 + $0xe0] sm:$0xff] %v807_v60  ;;  %v795_v63 = vadd.f32 %v771_v62, %v636_v53  ;;  %v1369_v2 = vpop.f32.mrb[47].mxu0  ;;  %1436 = vmatmul.mubr.f32.gmra.mrb[18].mxu1 %v807_v60 }
 0x214   : > { %1438 = vmatprep.mubr.msk.f32.mxu1 %vm1708_vm1, %v1706_v0 }
 0x215   : > { %v808_v4 = vmax.f32 %v795_v63, 0.0 }
 0x216   : > { %v776_v5 = vpop.f32.mrb[48].mxu0 }
 0x217   : > { %821 = vst [vmem:[%s2089_s11 + $0xf8] sm:$0xff] %v808_v4  ;;  %v796_v6 = vadd.f32 %v776_v5, %v637_v57  ;;  %v1372_v8 = vpop.f32.mrb[49].mxu0  ;;  %1439 = vmatmul.mubr.f32.gmra.mrb[20].mxu1 %v808_v4 }
 0x218   : > { %1441 = vmatprep.mubr.msk.f32.mxu1 %vm1708_vm1, %v1706_v0 }
 0x219   : > { %v809_v10 = vmax.f32 %v796_v6, 0.0 }
 0x21a   : > { %v781_v11 = vpop.f32.mrb[50].mxu0 }
 0x21b   : > { %822 = vst [vmem:[%s2089_s11 + $0x110] sm:$0xff] %v809_v10  ;;  %v797_v12 = vadd.f32 %v781_v11, %v638_v61  ;;  %v1375_v13 = vpop.f32.mrb[51].mxu0  ;;  %1442 = vmatmul.mubr.f32.gmra.mrb[22].mxu1 %v809_v10 }
 0x21c   : > { %1444 = vmatprep.mubr.msk.f32.mxu1 %vm1708_vm1, %v1706_v0 }
 0x21d   : > { %v810_v3 = vmax.f32 %v797_v12, 0.0 }
 0x21f   : > { %823 = vst [vmem:[%s2089_s11 + $0x128] sm:$0xff] %v810_v3  ;;  %1445 = vmatmul.mubr.f32.gmra.mrb[24].mxu1 %v810_v3 }
 0x2c2   : > { %v925_v7 = vpop.f32.mrb[0].mxu1 }
 0x2c3   : > { %v1509_v9 = vadd.f32 %v1159_v14, %v925_v7  ;;  %v1410_v15 = vpop.f32.mrb[1].mxu1 }
 0x2c5   : > { %v1002_v16 = vmax.f32 %v1509_v9, 0.0 }
 0x2c6   : > { %v930_v17 = vpop.f32.mrb[2].mxu1 }
 0x2c7   : > { %1015 = vst [vmem:[%s2089_s11 + $0x10] sm:$0xff] %v1002_v16  ;;  %v1510_v18 = vadd.f32 %v1159_v14, %v930_v17  ;;  %v1413_v1 = vpop.f32.mrb[3].mxu1 }
 0x2c9   : > { %v1003_v19 = vmax.f32 %v1510_v18, 0.0 }
 0x2ca   : > { %v935_v20 = vpop.f32.mrb[4].mxu1 }
 0x2cb   : > { %1016 = vst [vmem:[%s2089_s11 + $0x28] sm:$0xff] %v1003_v19  ;;  %v1511_v0 = vadd.f32 %v1159_v14, %v935_v20  ;;  %v1416_v21 = vpop.f32.mrb[5].mxu1 }
 0x2cd   : > { %v1004_v22 = vmax.f32 %v1511_v0, 0.0 }
 0x2ce   : > { %v940_v23 = vpop.f32.mrb[6].mxu1 }
 0x2cf   : > { %1017 = vst [vmem:[%s2089_s11 + $0x40] sm:$0xff] %v1004_v22  ;;  %v1512_v24 = vadd.f32 %v1159_v14, %v940_v23  ;;  %v1419_v25 = vpop.f32.mrb[7].mxu1 }
 0x2d1   : > { %v1005_v26 = vmax.f32 %v1512_v24, 0.0 }
 0x2d2   : > { %v945_v27 = vpop.f32.mrb[8].mxu1 }
 0x2d3   : > { %1018 = vst [vmem:[%s2089_s11 + $0x58] sm:$0xff] %v1005_v26  ;;  %v1513_v28 = vadd.f32 %v1159_v14, %v945_v27  ;;  %v1422_v29 = vpop.f32.mrb[9].mxu1 }
 0x2d5   : > { %v1006_v30 = vmax.f32 %v1513_v28, 0.0 }
 0x2d6   : > { %v950_v31 = vpop.f32.mrb[10].mxu1 }
 0x2d7   : > { %1019 = vst [vmem:[%s2089_s11 + $0x70] sm:$0xff] %v1006_v30  ;;  %v1514_v32 = vadd.f32 %v1159_v14, %v950_v31  ;;  %v1425_v33 = vpop.f32.mrb[11].mxu1 }
 0x2d9   : > { %v1007_v34 = vmax.f32 %v1514_v32, 0.0 }
 0x2da   : > { %v955_v35 = vpop.f32.mrb[12].mxu1 }
 0x2db   : > { %1020 = vst [vmem:[%s2089_s11 + $0x88] sm:$0xff] %v1007_v34  ;;  %v1515_v36 = vadd.f32 %v1159_v14, %v955_v35  ;;  %v1428_v38 = vpop.f32.mrb[13].mxu1 }
 0x2dd   : > { %v1008_v37 = vmax.f32 %v1515_v36, 0.0 }
 0x2de   : > { %v960_v39 = vpop.f32.mrb[14].mxu1 }
 0x2df   : > { %1021 = vst [vmem:[%s2089_s11 + $0xa0] sm:$0xff] %v1008_v37  ;;  %v1516_v40 = vadd.f32 %v1159_v14, %v960_v39  ;;  %v1431_v42 = vpop.f32.mrb[15].mxu1 }
 0x2e1   : > { %v1009_v43 = vmax.f32 %v1516_v40, 0.0 }
 0x2e2   : > { %v965_v41 = vpop.f32.mrb[16].mxu1 }
 0x2e3   : > { %1022 = vst [vmem:[%s2089_s11 + $0xb8] sm:$0xff] %v1009_v43  ;;  %v1517_v44 = vadd.f32 %v1159_v14, %v965_v41  ;;  %v1434_v46 = vpop.f32.mrb[17].mxu1 }
 0x2e5   : > { %v1010_v47 = vmax.f32 %v1517_v44, 0.0 }
 0x2e6   : > { %v970_v48 = vpop.f32.mrb[18].mxu1 }
 0x2e7   : > { %1023 = vst [vmem:[%s2089_s11 + $0xd0] sm:$0xff] %v1010_v47  ;;  %v1518_v45 = vadd.f32 %v1159_v14, %v970_v48  ;;  %v1437_v50 = vpop.f32.mrb[19].mxu1 }
 0x2e9   : > { %v1011_v51 = vmax.f32 %v1518_v45, 0.0 }
 0x2ea   : > { %v975_v52 = vpop.f32.mrb[20].mxu1 }
 0x2eb   : > { %1024 = vst [vmem:[%s2089_s11 + $0xe8] sm:$0xff] %v1011_v51  ;;  %v1519_v54 = vadd.f32 %v1159_v14, %v975_v52  ;;  %v1440_v49 = vpop.f32.mrb[21].mxu1 }
 0x2ed   : > { %v1012_v55 = vmax.f32 %v1519_v54, 0.0 }
 0x2ee   : > { %v980_v56 = vpop.f32.mrb[22].mxu1 }
 0x2ef   : > { %1025 = vst [vmem:[%s2089_s11 + $0x100] sm:$0xff] %v1012_v55  ;;  %v1520_v58 = vadd.f32 %v1159_v14, %v980_v56  ;;  %v1443_v59 = vpop.f32.mrb[23].mxu1 }
 0x2f1   : > { %v1013_v53 = vmax.f32 %v1520_v58, 0.0  ;;  %1035 = sbr.rel (!%p2325_p6) target bundleno = 789 (0x315), region = 44 }
 0x2f2   : > { %v985_v60 = vpop.f32.mrb[24].mxu1 }
 0x2f3   : > { %1026 = vst [vmem:[%s2089_s11 + $0x118] sm:$0xff] %v1013_v53  ;;  %v1521_v62 = vadd.f32 %v1159_v14, %v985_v60  ;;  %v1446_v63 = vpop.f32.mrb[25].mxu1 }
 0x2f5   : > { %v1014_v2 = vmax.f32 %v1521_v62, 0.0 }
 0x2f7   : > { %1027 = vst [vmem:[%s2089_s11 + $0x130] sm:$0xff] %v1014_v2 }
 0x2f8   : > { %s2332_s27 = smov (!%p1038_p9, %s1037_s27), 13 }
 0x2f9   : > { %s2255_s28 = smul.u32 384, %s2332_s27 }
 0x2fb   : > { %s1043_s29 = ssub.s32 4992, %s2255_s28 }
 0x2fc   : > { %1044 = vsyncadd %s2250_s22, %s1043_s29  ;;  %p1178_p10 = scmp.ne.s32.totalorder %s2255_s28, 0  ;;  %s1565_s30 = smul.u32 4992, %s1758_s19 }
 0x2fd   : > { %s1050_s6 = sshll.u32 %s2089_s11, 4  ;;  %s1709_s8 = smov [#allocation5]   ;;  %s2267_s6 = int_to_ptr.vmem [resolvable:$true] %s1050_s6 }
 0x2fe   : > { %s2265_s5 = scalar_lea.hbm %s2315_s4, %s1565_s30  ;;  %s1635_s23 = scalar_lea.vmem %s2267_s6, %s2255_s28 }
 0x2ff   : > { %p1636_p12 = scmp.ne.s32.totalorder %s2267_s6, %s1635_s23  ;;  %s1639_s9 = sshll.u32 %s1709_s8, 4  ;;  %s1640_s9 = int_to_ptr.vmem [resolvable:$false] %s1639_s9 }
 0x300   : > { %s1641_s19 = scalar_lea.vmem %s1640_s9, 9984  ;;  %p1642_p4 = scmp.lt.s32.totalorder %s2267_s6, %s1640_s9 }
 0x301   : > { %p1637_p2 = pnand %p1636_p12, %p1178_p10  ;;  %p1643_p7 = scmp.lt.s32.totalorder %s1641_s19, %s1635_s23 }
 0x303   : > { %p1638_p3 = pneg %p1637_p2  ;;  %p1644_p8 = por %p1643_p7, %p1642_p4 }
 0x305   : > { %p1645_p11 = pnand %p1644_p8, %p1638_p3 }
 0x307   : > { %1648 = shalt.err (!%p1645_p11)
}
 0x308   : > { %s1649_s10 = scalar_lea.hbm %s2265_s5, %s2255_s28  ;;  %s1653_s13 = scalar_lea.hbm %s2315_s4, 9600 }
 0x309   : > { %p1650_p13 = scmp.ne.s32.totalorder %s2265_s5, %s1649_s10  ;;  %p1654_p5 = scmp.lt.u32.totalorder %s2265_s5, %s2315_s4 }
 0x30a   : > { %p1655_p6 = scmp.lt.u32.totalorder %s1653_s13, %s1649_s10  ;;  %p1657_p12 = scmp.lt.u32.totalorder %s1649_s10, %s2265_s5 }
 0x30b   : > { %p1651_p1 = pnand %p1650_p13, %p1178_p10 }
 0x30c   : > { %p1656_p9 = por %p1655_p6, %p1654_p5 }
 0x30d   : > { %p1652_p0 = pneg %p1651_p1 }
 0x30e   : > { %p1658_p2 = por %p1657_p12, %p1656_p9 }
 0x310   : > { %p1659_p3 = pnand %p1658_p2, %p1652_p0 }
 0x312   : > { %1662 = shalt.err (!%p1659_p3)
}
 0x313   : > { %s1710_s27 = smov 384   ;;  %s1711_s29 = smov 24  }
 0x314   : > { %1056 = dma.vmem_to_hbm [thread:$0]  (%p1178_p10), %s2267_s6, %s2255_s28, %s2265_s5, %s2250_s22, %s1710_s27, %s1710_s27, %s1711_s29  }
 0x315 PF: > { %p1566_p4 = scmp.ge.s32.totalorder %s1701_s18, 2  ;;  %s1065_s30 = sand.u32 1, %s1689_s15  }
 0x316   : > { %p2326_p7 = scmp.ne.s32.totalorder %s2319_s26, 0  ;;  %s1066_s25 = scalar_lea.sflag [#allocation4], %s1065_s30 }
 0x318   : > { %p1560_p8 = pnand %p1566_p4, %p2326_p7 }
 0x31a   : > { %1684 = dma.done.wait (!%p1560_p8), %s1066_s25, 4992  }
 0x31b   : > { %1686 = vsyncadd (!%p1560_p8), %s1066_s25, 4294962304  ;;  %p15_p11 = scmp.ge.s32.totalorder %s1762_s21, 4   ;;  %s2327_s15 = smov %s1693_s16 }
 0x31c   : > { %s2328_s16 = smov %s1697_s17  ;;  %s2329_s17 = smov %s1773_s24 }
 0x31d   : > { %s2330_s18 = smov %s1762_s21  ;;  %17 = sbr.rel (!%p15_p11) target bundleno = 4 (0x4), region = 77 }
 0x324   :  { %1071 = vsyncpa [#allocation3], 1 }
 0x325   :  { %1073 = vsyncpa [#allocation3 + $0x1], 1 }
 0x326   :  { %1074 = vsyncpa [#allocation4], 1 }
 0x327   :  { %1076 = vsyncpa [#allocation4 + $0x1], 1 }

</bundles_post_ra>
